<compile_context>
chip_gen: v6e
topology: v6e:2x2x1
jax: 0.10.0
libtpu: 0.0.40
codegen_flags: <defaults>
</compile_context>

<pallas_src>
import functools

import jax
import jax.numpy as jnp
from jax import lax
from jax.experimental import pallas as pl
from jax.experimental.pallas import tpu as pltpu

K_DEFAULT = 14       # BruteForceLayer.__init__ default
_LANE = 128
_SUBLANE = 8


def _round_up(x, m):
    return (x + m - 1) // m * m


def _select_topk(scores, carry_idx, k):
    """Row-wise selection of the k largest entries of `scores`.

    scores:    [B, n] float32
    carry_idx: [B, n] int32   index carried with (and used to mask) each column
    Returns (values [B, k] f32, indices [B, k] i32), values descending,
    ties broken toward the smaller carried index (matches lax.top_k).
    Exact: one max-reduce + one min-reduce per selected element; the winner is
    masked out by its (unique) carried index so duplicate values survive.
    The masking pass is skipped on the last iteration.
    """
    big = jnp.int32(jnp.iinfo(jnp.int32).max)
    neg_inf = jnp.float32(-jnp.inf)
    vals, idxs = [], []
    s = scores
    for j in range(k):
        m = jnp.max(s, axis=-1, keepdims=True)                                     # XLU
        sel = jnp.min(jnp.where(s == m, carry_idx, big), axis=-1, keepdims=True)   # XLU
        vals.append(m)
        idxs.append(sel)
        if j + 1 < k:
            s = jnp.where(carry_idx == sel, neg_inf, s)   # mask only the winning column
    return jnp.concatenate(vals, axis=-1), jnp.concatenate(idxs, axis=-1)


def _brute_force_kernel(q_ref, w_ref, b_ref, ct_ref, val_ref, idx_ref,
                        qproj_ref, run_val_ref, run_idx_ref,
                        *, k, n_valid, block_n):
    n_step = pl.program_id(1)
    n_last = pl.num_programs(1) - 1

    # ---- once per batch tile (N-step 0): project queries, reset running top-K.
    @pl.when(n_step == 0)
    def _init():
        qp = jnp.dot(q_ref[...], w_ref[...], preferred_element_type=jnp.float32)
        qproj_ref[...] = qp + b_ref[...]              # bias [1, D] broadcasts
        run_val_ref[...] = jnp.full(run_val_ref.shape, -jnp.inf, run_val_ref.dtype)
        run_idx_ref[...] = jnp.zeros(run_idx_ref.shape, run_idx_ref.dtype)

    # ---- scores for this candidate block: [Bblk, Nblk], no in-kernel transpose.
    cand = ct_ref[...]                                # [D, Nblk] (streamed, may be bf16)
    scores = jnp.dot(qproj_ref[...].astype(cand.dtype), cand,
                     preferred_element_type=jnp.float32)

    local_cols = lax.broadcasted_iota(jnp.int32, scores.shape, 1)
    if n_valid % block_n != 0:                        # static: padding exists
        limit = n_valid - n_step * block_n            # scalar per step
        scores = jnp.where(local_cols < limit, scores, jnp.float32(-jnp.inf))
    global_cols = local_cols + n_step * block_n       # one scalar-broadcast add

    # ---- fused merge: select top-K over [scores | running] in one pass
    # (running slab appended after the lane-aligned block -> no lane rotation
    #  of the wide part; 2K XLU reductions per block instead of 4K).
    merged_v = jnp.concatenate([scores, run_val_ref[...]], axis=-1)
    merged_i = jnp.concatenate([global_cols, run_idx_ref[...]], axis=-1)
    new_v, new_i = _select_topk(merged_v, merged_i, k)

    bb, out_pad = run_val_ref.shape
    pad = out_pad - k
    if pad > 0:                                       # keep scratch lane-dense
        new_v = jnp.concatenate(
            [new_v, jnp.full((bb, pad), -jnp.inf, jnp.float32)], axis=-1)
        new_i = jnp.concatenate(
            [new_i, jnp.zeros((bb, pad), jnp.int32)], axis=-1)
    run_val_ref[...] = new_v
    run_idx_ref[...] = new_i

    # ---- last N step: flush running top-K into the lane-padded outputs.
    @pl.when(n_step == n_last)
    def _finish():
        val_ref[...] = run_val_ref[...]
        idx_ref[...] = run_idx_ref[...]


def brute_force_topk(queries, w, b, candidates, k=K_DEFAULT, block_n=1024):
    """queries [B, Din], w [Din, D], b [1, D], candidates [N, D]
       -> (values [B, k] f32, indices [B, k] i32)."""
    batch, d_in = queries.shape
    d_in2, d_model = w.shape
    n_cand, d_model2 = candidates.shape
    assert d_in == d_in2 and d_model == d_model2 and b.shape == (1, d_model)
    assert n_cand >= k, "top-k requires at least k candidates"

    # Candidate tile: multiple of 128 lanes; auto-capped so each double-buffered
    # tile stays ~2 MiB -> well under scoped VMEM on v5e/v6e/v7x even for big D.
    cand_bytes = jnp.dtype(candidates.dtype).itemsize
    max_block_n = max(_LANE,
                      (2 * 1024 * 1024 // max(d_model * cand_bytes, 1)) // _LANE * _LANE)
    block_n = _round_up(max(block_n, _LANE), _LANE)
    block_n = min(block_n, max_block_n)
    block_n = min(block_n, _round_up(n_cand, _LANE))
    n_pad = _round_up(n_cand, block_n)

    # Batch tile: pad to the sublane granule; cap at 128 rows (MXU height).
    b_pad = _round_up(batch, _SUBLANE)
    if b_pad > _LANE:
        b_pad = _round_up(batch, _LANE)
        block_b = _LANE
    else:
        block_b = b_pad

    out_pad = _round_up(max(k, _LANE), _LANE)         # lane-dense output slab

    # One-time layout work (outside the streamed loop).
    cand_t = jnp.transpose(candidates)                # [D, N]
    if n_pad != n_cand:
        cand_t = jnp.pad(cand_t, ((0, 0), (0, n_pad - n_cand)))
    q_in = queries
    if b_pad != batch:
        q_in = jnp.pad(queries, ((0, b_pad - batch), (0, 0)))

    grid = (b_pad // block_b, n_pad // block_n)
    kernel = functools.partial(_brute_force_kernel, k=k, n_valid=n_cand,
                               block_n=block_n)

    vals_p, idx_p = pl.pallas_call(
        kernel,
        out_shape=(
            jax.ShapeDtypeStruct((b_pad, out_pad), jnp.float32),
            jax.ShapeDtypeStruct((b_pad, out_pad), jnp.int32),
        ),
        grid_spec=pltpu.PrefetchScalarGridSpec(
            num_scalar_prefetch=0,
            grid=grid,
            in_specs=[
                pl.BlockSpec((block_b, d_in), lambda bi, ni: (bi, 0)),     # queries
                pl.BlockSpec((d_in, d_model), lambda bi, ni: (0, 0)),      # W
                pl.BlockSpec((1, d_model), lambda bi, ni: (0, 0)),         # bias
                pl.BlockSpec((d_model, block_n), lambda bi, ni: (0, ni)),  # candidates^T (streamed)
            ],
            out_specs=(
                pl.BlockSpec((block_b, out_pad), lambda bi, ni: (bi, 0)),
                pl.BlockSpec((block_b, out_pad), lambda bi, ni: (bi, 0)),
            ),
            scratch_shapes=[
                pltpu.VMEM((block_b, d_model), jnp.float32),   # projected queries
                pltpu.VMEM((block_b, out_pad), jnp.float32),   # running top-K values (lane-dense)
                pltpu.VMEM((block_b, out_pad), jnp.int32),     # running top-K indices
            ],
        ),
        compiler_params=pltpu.CompilerParams(
            dimension_semantics=("parallel", "arbitrary"),
            vmem_limit_bytes=32 * 1024 * 1024,
        ),
    )(q_in, w, b, cand_t)

    return vals_p[:batch, :k], idx_p[:batch, :k]


if __name__ == "__main__":
    # Small deterministic shapes consistent with BruteForceLayer.forward.
    B, Din, D, N, K = 8, 32, 32, 300, 14

    key = jax.random.PRNGKey(0)
    k_q, k_w, k_b, k_c = jax.random.split(key, 4)

    queries = jax.random.normal(k_q, (B, Din), dtype=jnp.float32)
    # Deterministic query_model parameters (Linear Din -> D).
    w = jax.random.normal(k_w, (Din, D), dtype=jnp.float32) * 0.1
    b = jax.random.normal(k_b, (1, D), dtype=jnp.float32) * 0.1
    # Indexed candidates (BruteForceLayer.index(candidates)).
    candidates = jax.random.normal(k_c, (N, D), dtype=jnp.float32)

    # block_n=128 so the test exercises multi-block streaming, the fused merge,
    # and pad-column masking (N=300 -> 3 blocks of 128, 84 padded columns).
    values, indices = brute_force_topk(queries, w, b, candidates, k=K, block_n=128)
    jax.block_until_ready((values, indices))

    # Pure-JAX reference of the same forward semantics.
    q_proj = queries @ w + b
    scores_ref = q_proj @ candidates.T
    ref_vals, ref_idx = lax.top_k(scores_ref, K)

    assert values.shape == (B, K) and indices.shape == (B, K)
    assert indices.dtype == jnp.int32
    assert jnp.allclose(values, ref_vals, atol=1e-3, rtol=1e-3), "values mismatch"
    # Index check robust to ulp-level / exact-tie reorderings: the reference
    # score at each chosen index must equal the reference top-k value at that
    # slot, indices must be unique per row and in range.
    picked = jnp.take_along_axis(scores_ref, indices, axis=-1)
    assert jnp.allclose(picked, ref_vals, atol=1e-3, rtol=1e-3), "index mismatch"
    sorted_idx = jnp.sort(indices, axis=-1)
    assert bool(jnp.all(sorted_idx[:, 1:] != sorted_idx[:, :-1])), "duplicate indices"
    assert bool(jnp.all((indices >= 0) & (indices < N))), "index out of range"

    print("KERNEL_OK")
</pallas_src>

<mosaic_0001>
module attributes {stable_mosaic.version = 11 : i64} {
  func.func @_brute_force_kernel(%arg0: i32, %arg1: i32, %arg2: memref<8x32xf32, #tpu.memory_space<vmem>>, %arg3: memref<32x32xf32, #tpu.memory_space<vmem>>, %arg4: memref<1x32xf32, #tpu.memory_space<vmem>>, %arg5: memref<32x128xf32, #tpu.memory_space<vmem>>, %arg6: memref<8x128xf32, #tpu.memory_space<vmem>>, %arg7: memref<8x128xi32, #tpu.memory_space<vmem>>, %arg8: memref<8x32xf32, #tpu.memory_space<vmem>>, %arg9: memref<8x128xf32, #tpu.memory_space<vmem>>, %arg10: memref<8x128xi32, #tpu.memory_space<vmem>>) attributes {dimension_semantics = [#tpu.dimension_semantics<parallel>, #tpu.dimension_semantics<arbitrary>], iteration_bounds = array<i64: 1, 3>, scalar_prefetch = 0 : i64, scratch_operands = 3 : i64, tpu.core_type = #tpu.core_type<tc>, window_params = [{transform_indices = @transform_0, window_bounds = array<i64: 8, 32>}, {pipeline_mode = #tpu.pipeline_mode<synchronous>, transform_indices = @transform_1, window_bounds = array<i64: 32, 32>}, {pipeline_mode = #tpu.pipeline_mode<synchronous>, transform_indices = @transform_2, window_bounds = array<i64: 1, 32>}, {transform_indices = @transform_3, window_bounds = array<i64: 32, 128>}, {transform_indices = @transform_4, window_bounds = array<i64: 8, 128>}, {transform_indices = @transform_5, window_bounds = array<i64: 8, 128>}]} {
    %c0_i32 = arith.constant 0 : i32
    %0 = arith.cmpi eq, %arg1, %c0_i32 : i32
    %1 = arith.extui %0 : i1 to i32
    %c0_i32_0 = arith.constant 0 : i32
    %2 = arith.cmpi ne, %1, %c0_i32_0 : i32
    scf.if %2 {
      %c0_71 = arith.constant 0 : index
      %c0_72 = arith.constant 0 : index
      %195 = vector.load %arg2[%c0_71, %c0_72] : memref<8x32xf32, #tpu.memory_space<vmem>>, vector<8x32xf32>
      %c0_73 = arith.constant 0 : index
      %c0_74 = arith.constant 0 : index
      %196 = vector.load %arg3[%c0_73, %c0_74] : memref<32x32xf32, #tpu.memory_space<vmem>>, vector<32x32xf32>
      %cst_75 = arith.constant dense<0.000000e+00> : vector<8x32xf32>
      %197 = tpu.matmul %195, %196, %cst_75 {dimension_numbers = #tpu.dot_dimension_numbers<[1], [0], [0], [1], [0, 0, 1, 1], [], []>} : vector<8x32xf32>, vector<32x32xf32>, vector<8x32xf32> -> vector<8x32xf32>
      %c0_76 = arith.constant 0 : index
      %c0_77 = arith.constant 0 : index
      %198 = vector.load %arg4[%c0_76, %c0_77] : memref<1x32xf32, #tpu.memory_space<vmem>>, vector<1x32xf32>
      %199 = vector.broadcast %198 : vector<1x32xf32> to vector<8x32xf32>
      %200 = arith.addf %197, %199 : vector<8x32xf32>
      %c0_78 = arith.constant 0 : index
      %c0_79 = arith.constant 0 : index
      %201 = vector.load %arg8[%c0_78, %c0_79] : memref<8x32xf32, #tpu.memory_space<vmem>>, vector<8x32xf32>
      tpu.vector_store %arg8[%c0_78, %c0_79], %200 {strides = array<i32>} : memref<8x32xf32, #tpu.memory_space<vmem>>, vector<8x32xf32>,
      %cst_80 = arith.constant 0xFF800000 : f32
      %202 = vector.broadcast %cst_80 : f32 to vector<8x128xf32>
      %c0_81 = arith.constant 0 : index
      %c0_82 = arith.constant 0 : index
      %203 = vector.load %arg9[%c0_81, %c0_82] : memref<8x128xf32, #tpu.memory_space<vmem>>, vector<8x128xf32>
      tpu.vector_store %arg9[%c0_81, %c0_82], %202 {strides = array<i32>} : memref<8x128xf32, #tpu.memory_space<vmem>>, vector<8x128xf32>,
      %c0_i32_83 = arith.constant 0 : i32
      %204 = vector.broadcast %c0_i32_83 : i32 to vector<8x128xi32>
      %c0_84 = arith.constant 0 : index
      %c0_85 = arith.constant 0 : index
      %205 = vector.load %arg10[%c0_84, %c0_85] : memref<8x128xi32, #tpu.memory_space<vmem>>, vector<8x128xi32>
      tpu.vector_store %arg10[%c0_84, %c0_85], %204 {strides = array<i32>} : memref<8x128xi32, #tpu.memory_space<vmem>>, vector<8x128xi32>,
    } else {
    }
    %c0 = arith.constant 0 : index
    %c0_1 = arith.constant 0 : index
    %3 = vector.load %arg5[%c0, %c0_1] : memref<32x128xf32, #tpu.memory_space<vmem>>, vector<32x128xf32>
    %c0_2 = arith.constant 0 : index
    %c0_3 = arith.constant 0 : index
    %4 = vector.load %arg8[%c0_2, %c0_3] : memref<8x32xf32, #tpu.memory_space<vmem>>, vector<8x32xf32>
    %cst = arith.constant dense<0.000000e+00> : vector<8x128xf32>
    %5 = tpu.matmul %4, %3, %cst {dimension_numbers = #tpu.dot_dimension_numbers<[1], [0], [0], [1], [0, 0, 1, 1], [], []>} : vector<8x32xf32>, vector<32x128xf32>, vector<8x128xf32> -> vector<8x128xf32>
    %6 = tpu.iota {dimensions = array<i32: 1>} : vector<8x128xi32>
    %c128_i32 = arith.constant 128 : i32
    %7 = arith.muli %arg1, %c128_i32 : i32
    %c300_i32 = arith.constant 300 : i32
    %8 = arith.subi %c300_i32, %7 : i32
    %9 = vector.broadcast %8 : i32 to vector<8x128xi32>
    %10 = arith.cmpi slt, %6, %9 : vector<8x128xi32>
    %cst_4 = arith.constant 0xFF800000 : f32
    %11 = vector.broadcast %cst_4 : f32 to vector<8x128xf32>
    %12 = arith.select %10, %5, %11 : vector<8x128xi1>, vector<8x128xf32>
    %c128_i32_5 = arith.constant 128 : i32
    %13 = arith.muli %arg1, %c128_i32_5 : i32
    %14 = vector.broadcast %13 : i32 to vector<8x128xi32>
    %15 = arith.addi %6, %14 : vector<8x128xi32>
    %c0_6 = arith.constant 0 : index
    %c0_7 = arith.constant 0 : index
    %16 = vector.load %arg9[%c0_6, %c0_7] : memref<8x128xf32, #tpu.memory_space<vmem>>, vector<8x128xf32>
    %17 = tpu.concatenate %12, %16 in 1 : vector<8x128xf32>, vector<8x128xf32> -> vector<8x256xf32>
    %c0_8 = arith.constant 0 : index
    %c0_9 = arith.constant 0 : index
    %18 = vector.load %arg10[%c0_8, %c0_9] : memref<8x128xi32, #tpu.memory_space<vmem>>, vector<8x128xi32>
    %19 = tpu.concatenate %15, %18 in 1 : vector<8x128xi32>, vector<8x128xi32> -> vector<8x256xi32>
    %cst_10 = arith.constant dense<0xFF800000> : vector<8xf32>
    %20 = vector.multi_reduction <maximumf>, %17, %cst_10 [1] : vector<8x256xf32> to vector<8xf32>
    %21 = vector.shape_cast %20 : vector<8xf32> to vector<8x1xf32>
    %22 = vector.broadcast %21 : vector<8x1xf32> to vector<8x256xf32>
    %23 = arith.cmpf oeq, %17, %22 : vector<8x256xf32>
    %c2147483647_i32 = arith.constant 2147483647 : i32
    %24 = vector.broadcast %c2147483647_i32 : i32 to vector<8x256xi32>
    %25 = arith.select %23, %19, %24 : vector<8x256xi1>, vector<8x256xi32>
    %cst_11 = arith.constant dense<2147483647> : vector<8xi32>
    %26 = vector.multi_reduction <minsi>, %25, %cst_11 [1] : vector<8x256xi32> to vector<8xi32>
    %27 = vector.shape_cast %26 : vector<8xi32> to vector<8x1xi32>
    %28 = vector.broadcast %27 : vector<8x1xi32> to vector<8x256xi32>
    %29 = arith.cmpi eq, %19, %28 : vector<8x256xi32>
    %cst_12 = arith.constant 0xFF800000 : f32
    %30 = vector.broadcast %cst_12 : f32 to vector<8x256xf32>
    %31 = arith.select %29, %30, %17 : vector<8x256xi1>, vector<8x256xf32>
    %cst_13 = arith.constant dense<0xFF800000> : vector<8xf32>
    %32 = vector.multi_reduction <maximumf>, %31, %cst_13 [1] : vector<8x256xf32> to vector<8xf32>
    %33 = vector.shape_cast %32 : vector<8xf32> to vector<8x1xf32>
    %34 = vector.broadcast %33 : vector<8x1xf32> to vector<8x256xf32>
    %35 = arith.cmpf oeq, %31, %34 : vector<8x256xf32>
    %c2147483647_i32_14 = arith.constant 2147483647 : i32
    %36 = vector.broadcast %c2147483647_i32_14 : i32 to vector<8x256xi32>
    %37 = arith.select %35, %19, %36 : vector<8x256xi1>, vector<8x256xi32>
    %cst_15 = arith.constant dense<2147483647> : vector<8xi32>
    %38 = vector.multi_reduction <minsi>, %37, %cst_15 [1] : vector<8x256xi32> to vector<8xi32>
    %39 = vector.shape_cast %38 : vector<8xi32> to vector<8x1xi32>
    %40 = vector.broadcast %39 : vector<8x1xi32> to vector<8x256xi32>
    %41 = arith.cmpi eq, %19, %40 : vector<8x256xi32>
    %cst_16 = arith.constant 0xFF800000 : f32
    %42 = vector.broadcast %cst_16 : f32 to vector<8x256xf32>
    %43 = arith.select %41, %42, %31 : vector<8x256xi1>, vector<8x256xf32>
    %cst_17 = arith.constant dense<0xFF800000> : vector<8xf32>
    %44 = vector.multi_reduction <maximumf>, %43, %cst_17 [1] : vector<8x256xf32> to vector<8xf32>
    %45 = vector.shape_cast %44 : vector<8xf32> to vector<8x1xf32>
    %46 = vector.broadcast %45 : vector<8x1xf32> to vector<8x256xf32>
    %47 = arith.cmpf oeq, %43, %46 : vector<8x256xf32>
    %c2147483647_i32_18 = arith.constant 2147483647 : i32
    %48 = vector.broadcast %c2147483647_i32_18 : i32 to vector<8x256xi32>
    %49 = arith.select %47, %19, %48 : vector<8x256xi1>, vector<8x256xi32>
    %cst_19 = arith.constant dense<2147483647> : vector<8xi32>
    %50 = vector.multi_reduction <minsi>, %49, %cst_19 [1] : vector<8x256xi32> to vector<8xi32>
    %51 = vector.shape_cast %50 : vector<8xi32> to vector<8x1xi32>
    %52 = vector.broadcast %51 : vector<8x1xi32> to vector<8x256xi32>
    %53 = arith.cmpi eq, %19, %52 : vector<8x256xi32>
    %cst_20 = arith.constant 0xFF800000 : f32
    %54 = vector.broadcast %cst_20 : f32 to vector<8x256xf32>
    %55 = arith.select %53, %54, %43 : vector<8x256xi1>, vector<8x256xf32>
    %cst_21 = arith.constant dense<0xFF800000> : vector<8xf32>
    %56 = vector.multi_reduction <maximumf>, %55, %cst_21 [1] : vector<8x256xf32> to vector<8xf32>
    %57 = vector.shape_cast %56 : vector<8xf32> to vector<8x1xf32>
    %58 = vector.broadcast %57 : vector<8x1xf32> to vector<8x256xf32>
    %59 = arith.cmpf oeq, %55, %58 : vector<8x256xf32>
    %c2147483647_i32_22 = arith.constant 2147483647 : i32
    %60 = vector.broadcast %c2147483647_i32_22 : i32 to vector<8x256xi32>
    %61 = arith.select %59, %19, %60 : vector<8x256xi1>, vector<8x256xi32>
    %cst_23 = arith.constant dense<2147483647> : vector<8xi32>
    %62 = vector.multi_reduction <minsi>, %61, %cst_23 [1] : vector<8x256xi32> to vector<8xi32>
    %63 = vector.shape_cast %62 : vector<8xi32> to vector<8x1xi32>
    %64 = vector.broadcast %63 : vector<8x1xi32> to vector<8x256xi32>
    %65 = arith.cmpi eq, %19, %64 : vector<8x256xi32>
    %cst_24 = arith.constant 0xFF800000 : f32
    %66 = vector.broadcast %cst_24 : f32 to vector<8x256xf32>
    %67 = arith.select %65, %66, %55 : vector<8x256xi1>, vector<8x256xf32>
    %cst_25 = arith.constant dense<0xFF800000> : vector<8xf32>
    %68 = vector.multi_reduction <maximumf>, %67, %cst_25 [1] : vector<8x256xf32> to vector<8xf32>
    %69 = vector.shape_cast %68 : vector<8xf32> to vector<8x1xf32>
    %70 = vector.broadcast %69 : vector<8x1xf32> to vector<8x256xf32>
    %71 = arith.cmpf oeq, %67, %70 : vector<8x256xf32>
    %c2147483647_i32_26 = arith.constant 2147483647 : i32
    %72 = vector.broadcast %c2147483647_i32_26 : i32 to vector<8x256xi32>
    %73 = arith.select %71, %19, %72 : vector<8x256xi1>, vector<8x256xi32>
    %cst_27 = arith.constant dense<2147483647> : vector<8xi32>
    %74 = vector.multi_reduction <minsi>, %73, %cst_27 [1] : vector<8x256xi32> to vector<8xi32>
    %75 = vector.shape_cast %74 : vector<8xi32> to vector<8x1xi32>
    %76 = vector.broadcast %75 : vector<8x1xi32> to vector<8x256xi32>
    %77 = arith.cmpi eq, %19, %76 : vector<8x256xi32>
    %cst_28 = arith.constant 0xFF800000 : f32
    %78 = vector.broadcast %cst_28 : f32 to vector<8x256xf32>
    %79 = arith.select %77, %78, %67 : vector<8x256xi1>, vector<8x256xf32>
    %cst_29 = arith.constant dense<0xFF800000> : vector<8xf32>
    %80 = vector.multi_reduction <maximumf>, %79, %cst_29 [1] : vector<8x256xf32> to vector<8xf32>
    %81 = vector.shape_cast %80 : vector<8xf32> to vector<8x1xf32>
    %82 = vector.broadcast %81 : vector<8x1xf32> to vector<8x256xf32>
    %83 = arith.cmpf oeq, %79, %82 : vector<8x256xf32>
    %c2147483647_i32_30 = arith.constant 2147483647 : i32
    %84 = vector.broadcast %c2147483647_i32_30 : i32 to vector<8x256xi32>
    %85 = arith.select %83, %19, %84 : vector<8x256xi1>, vector<8x256xi32>
    %cst_31 = arith.constant dense<2147483647> : vector<8xi32>
    %86 = vector.multi_reduction <minsi>, %85, %cst_31 [1] : vector<8x256xi32> to vector<8xi32>
    %87 = vector.shape_cast %86 : vector<8xi32> to vector<8x1xi32>
    %88 = vector.broadcast %87 : vector<8x1xi32> to vector<8x256xi32>
    %89 = arith.cmpi eq, %19, %88 : vector<8x256xi32>
    %cst_32 = arith.constant 0xFF800000 : f32
    %90 = vector.broadcast %cst_32 : f32 to vector<8x256xf32>
    %91 = arith.select %89, %90, %79 : vector<8x256xi1>, vector<8x256xf32>
    %cst_33 = arith.constant dense<0xFF800000> : vector<8xf32>
    %92 = vector.multi_reduction <maximumf>, %91, %cst_33 [1] : vector<8x256xf32> to vector<8xf32>
    %93 = vector.shape_cast %92 : vector<8xf32> to vector<8x1xf32>
    %94 = vector.broadcast %93 : vector<8x1xf32> to vector<8x256xf32>
    %95 = arith.cmpf oeq, %91, %94 : vector<8x256xf32>
    %c2147483647_i32_34 = arith.constant 2147483647 : i32
    %96 = vector.broadcast %c2147483647_i32_34 : i32 to vector<8x256xi32>
    %97 = arith.select %95, %19, %96 : vector<8x256xi1>, vector<8x256xi32>
    %cst_35 = arith.constant dense<2147483647> : vector<8xi32>
    %98 = vector.multi_reduction <minsi>, %97, %cst_35 [1] : vector<8x256xi32> to vector<8xi32>
    %99 = vector.shape_cast %98 : vector<8xi32> to vector<8x1xi32>
    %100 = vector.broadcast %99 : vector<8x1xi32> to vector<8x256xi32>
    %101 = arith.cmpi eq, %19, %100 : vector<8x256xi32>
    %cst_36 = arith.constant 0xFF800000 : f32
    %102 = vector.broadcast %cst_36 : f32 to vector<8x256xf32>
    %103 = arith.select %101, %102, %91 : vector<8x256xi1>, vector<8x256xf32>
    %cst_37 = arith.constant dense<0xFF800000> : vector<8xf32>
    %104 = vector.multi_reduction <maximumf>, %103, %cst_37 [1] : vector<8x256xf32> to vector<8xf32>
    %105 = vector.shape_cast %104 : vector<8xf32> to vector<8x1xf32>
    %106 = vector.broadcast %105 : vector<8x1xf32> to vector<8x256xf32>
    %107 = arith.cmpf oeq, %103, %106 : vector<8x256xf32>
    %c2147483647_i32_38 = arith.constant 2147483647 : i32
    %108 = vector.broadcast %c2147483647_i32_38 : i32 to vector<8x256xi32>
    %109 = arith.select %107, %19, %108 : vector<8x256xi1>, vector<8x256xi32>
    %cst_39 = arith.constant dense<2147483647> : vector<8xi32>
    %110 = vector.multi_reduction <minsi>, %109, %cst_39 [1] : vector<8x256xi32> to vector<8xi32>
    %111 = vector.shape_cast %110 : vector<8xi32> to vector<8x1xi32>
    %112 = vector.broadcast %111 : vector<8x1xi32> to vector<8x256xi32>
    %113 = arith.cmpi eq, %19, %112 : vector<8x256xi32>
    %cst_40 = arith.constant 0xFF800000 : f32
    %114 = vector.broadcast %cst_40 : f32 to vector<8x256xf32>
    %115 = arith.select %113, %114, %103 : vector<8x256xi1>, vector<8x256xf32>
    %cst_41 = arith.constant dense<0xFF800000> : vector<8xf32>
    %116 = vector.multi_reduction <maximumf>, %115, %cst_41 [1] : vector<8x256xf32> to vector<8xf32>
    %117 = vector.shape_cast %116 : vector<8xf32> to vector<8x1xf32>
    %118 = vector.broadcast %117 : vector<8x1xf32> to vector<8x256xf32>
    %119 = arith.cmpf oeq, %115, %118 : vector<8x256xf32>
    %c2147483647_i32_42 = arith.constant 2147483647 : i32
    %120 = vector.broadcast %c2147483647_i32_42 : i32 to vector<8x256xi32>
    %121 = arith.select %119, %19, %120 : vector<8x256xi1>, vector<8x256xi32>
    %cst_43 = arith.constant dense<2147483647> : vector<8xi32>
    %122 = vector.multi_reduction <minsi>, %121, %cst_43 [1] : vector<8x256xi32> to vector<8xi32>
    %123 = vector.shape_cast %122 : vector<8xi32> to vector<8x1xi32>
    %124 = vector.broadcast %123 : vector<8x1xi32> to vector<8x256xi32>
    %125 = arith.cmpi eq, %19, %124 : vector<8x256xi32>
    %cst_44 = arith.constant 0xFF800000 : f32
    %126 = vector.broadcast %cst_44 : f32 to vector<8x256xf32>
    %127 = arith.select %125, %126, %115 : vector<8x256xi1>, vector<8x256xf32>
    %cst_45 = arith.constant dense<0xFF800000> : vector<8xf32>
    %128 = vector.multi_reduction <maximumf>, %127, %cst_45 [1] : vector<8x256xf32> to vector<8xf32>
    %129 = vector.shape_cast %128 : vector<8xf32> to vector<8x1xf32>
    %130 = vector.broadcast %129 : vector<8x1xf32> to vector<8x256xf32>
    %131 = arith.cmpf oeq, %127, %130 : vector<8x256xf32>
    %c2147483647_i32_46 = arith.constant 2147483647 : i32
    %132 = vector.broadcast %c2147483647_i32_46 : i32 to vector<8x256xi32>
    %133 = arith.select %131, %19, %132 : vector<8x256xi1>, vector<8x256xi32>
    %cst_47 = arith.constant dense<2147483647> : vector<8xi32>
    %134 = vector.multi_reduction <minsi>, %133, %cst_47 [1] : vector<8x256xi32> to vector<8xi32>
    %135 = vector.shape_cast %134 : vector<8xi32> to vector<8x1xi32>
    %136 = vector.broadcast %135 : vector<8x1xi32> to vector<8x256xi32>
    %137 = arith.cmpi eq, %19, %136 : vector<8x256xi32>
    %cst_48 = arith.constant 0xFF800000 : f32
    %138 = vector.broadcast %cst_48 : f32 to vector<8x256xf32>
    %139 = arith.select %137, %138, %127 : vector<8x256xi1>, vector<8x256xf32>
    %cst_49 = arith.constant dense<0xFF800000> : vector<8xf32>
    %140 = vector.multi_reduction <maximumf>, %139, %cst_49 [1] : vector<8x256xf32> to vector<8xf32>
    %141 = vector.shape_cast %140 : vector<8xf32> to vector<8x1xf32>
    %142 = vector.broadcast %141 : vector<8x1xf32> to vector<8x256xf32>
    %143 = arith.cmpf oeq, %139, %142 : vector<8x256xf32>
    %c2147483647_i32_50 = arith.constant 2147483647 : i32
    %144 = vector.broadcast %c2147483647_i32_50 : i32 to vector<8x256xi32>
    %145 = arith.select %143, %19, %144 : vector<8x256xi1>, vector<8x256xi32>
    %cst_51 = arith.constant dense<2147483647> : vector<8xi32>
    %146 = vector.multi_reduction <minsi>, %145, %cst_51 [1] : vector<8x256xi32> to vector<8xi32>
    %147 = vector.shape_cast %146 : vector<8xi32> to vector<8x1xi32>
    %148 = vector.broadcast %147 : vector<8x1xi32> to vector<8x256xi32>
    %149 = arith.cmpi eq, %19, %148 : vector<8x256xi32>
    %cst_52 = arith.constant 0xFF800000 : f32
    %150 = vector.broadcast %cst_52 : f32 to vector<8x256xf32>
    %151 = arith.select %149, %150, %139 : vector<8x256xi1>, vector<8x256xf32>
    %cst_53 = arith.constant dense<0xFF800000> : vector<8xf32>
    %152 = vector.multi_reduction <maximumf>, %151, %cst_53 [1] : vector<8x256xf32> to vector<8xf32>
    %153 = vector.shape_cast %152 : vector<8xf32> to vector<8x1xf32>
    %154 = vector.broadcast %153 : vector<8x1xf32> to vector<8x256xf32>
    %155 = arith.cmpf oeq, %151, %154 : vector<8x256xf32>
    %c2147483647_i32_54 = arith.constant 2147483647 : i32
    %156 = vector.broadcast %c2147483647_i32_54 : i32 to vector<8x256xi32>
    %157 = arith.select %155, %19, %156 : vector<8x256xi1>, vector<8x256xi32>
    %cst_55 = arith.constant dense<2147483647> : vector<8xi32>
    %158 = vector.multi_reduction <minsi>, %157, %cst_55 [1] : vector<8x256xi32> to vector<8xi32>
    %159 = vector.shape_cast %158 : vector<8xi32> to vector<8x1xi32>
    %160 = vector.broadcast %159 : vector<8x1xi32> to vector<8x256xi32>
    %161 = arith.cmpi eq, %19, %160 : vector<8x256xi32>
    %cst_56 = arith.constant 0xFF800000 : f32
    %162 = vector.broadcast %cst_56 : f32 to vector<8x256xf32>
    %163 = arith.select %161, %162, %151 : vector<8x256xi1>, vector<8x256xf32>
    %cst_57 = arith.constant dense<0xFF800000> : vector<8xf32>
    %164 = vector.multi_reduction <maximumf>, %163, %cst_57 [1] : vector<8x256xf32> to vector<8xf32>
    %165 = vector.shape_cast %164 : vector<8xf32> to vector<8x1xf32>
    %166 = vector.broadcast %165 : vector<8x1xf32> to vector<8x256xf32>
    %167 = arith.cmpf oeq, %163, %166 : vector<8x256xf32>
    %c2147483647_i32_58 = arith.constant 2147483647 : i32
    %168 = vector.broadcast %c2147483647_i32_58 : i32 to vector<8x256xi32>
    %169 = arith.select %167, %19, %168 : vector<8x256xi1>, vector<8x256xi32>
    %cst_59 = arith.constant dense<2147483647> : vector<8xi32>
    %170 = vector.multi_reduction <minsi>, %169, %cst_59 [1] : vector<8x256xi32> to vector<8xi32>
    %171 = vector.shape_cast %170 : vector<8xi32> to vector<8x1xi32>
    %172 = vector.broadcast %171 : vector<8x1xi32> to vector<8x256xi32>
    %173 = arith.cmpi eq, %19, %172 : vector<8x256xi32>
    %cst_60 = arith.constant 0xFF800000 : f32
    %174 = vector.broadcast %cst_60 : f32 to vector<8x256xf32>
    %175 = arith.select %173, %174, %163 : vector<8x256xi1>, vector<8x256xf32>
    %cst_61 = arith.constant dense<0xFF800000> : vector<8xf32>
    %176 = vector.multi_reduction <maximumf>, %175, %cst_61 [1] : vector<8x256xf32> to vector<8xf32>
    %177 = vector.shape_cast %176 : vector<8xf32> to vector<8x1xf32>
    %178 = vector.broadcast %177 : vector<8x1xf32> to vector<8x256xf32>
    %179 = arith.cmpf oeq, %175, %178 : vector<8x256xf32>
    %c2147483647_i32_62 = arith.constant 2147483647 : i32
    %180 = vector.broadcast %c2147483647_i32_62 : i32 to vector<8x256xi32>
    %181 = arith.select %179, %19, %180 : vector<8x256xi1>, vector<8x256xi32>
    %cst_63 = arith.constant dense<2147483647> : vector<8xi32>
    %182 = vector.multi_reduction <minsi>, %181, %cst_63 [1] : vector<8x256xi32> to vector<8xi32>
    %183 = vector.shape_cast %182 : vector<8xi32> to vector<8x1xi32>
    %184 = tpu.concatenate %21, %33, %45, %57, %69, %81, %93, %105, %117, %129, %141, %153, %165, %177 in 1 : vector<8x1xf32>, vector<8x1xf32>, vector<8x1xf32>, vector<8x1xf32>, vector<8x1xf32>, vector<8x1xf32>, vector<8x1xf32>, vector<8x1xf32>, vector<8x1xf32>, vector<8x1xf32>, vector<8x1xf32>, vector<8x1xf32>, vector<8x1xf32>, vector<8x1xf32> -> vector<8x14xf32>
    %185 = tpu.concatenate %27, %39, %51, %63, %75, %87, %99, %111, %123, %135, %147, %159, %171, %183 in 1 : vector<8x1xi32>, vector<8x1xi32>, vector<8x1xi32>, vector<8x1xi32>, vector<8x1xi32>, vector<8x1xi32>, vector<8x1xi32>, vector<8x1xi32>, vector<8x1xi32>, vector<8x1xi32>, vector<8x1xi32>, vector<8x1xi32>, vector<8x1xi32>, vector<8x1xi32> -> vector<8x14xi32>
    %cst_64 = arith.constant 0xFF800000 : f32
    %186 = vector.broadcast %cst_64 : f32 to vector<8x114xf32>
    %187 = tpu.concatenate %184, %186 in 1 : vector<8x14xf32>, vector<8x114xf32> -> vector<8x128xf32>
    %c0_i32_65 = arith.constant 0 : i32
    %188 = vector.broadcast %c0_i32_65 : i32 to vector<8x114xi32>
    %189 = tpu.concatenate %185, %188 in 1 : vector<8x14xi32>, vector<8x114xi32> -> vector<8x128xi32>
    %c0_66 = arith.constant 0 : index
    %c0_67 = arith.constant 0 : index
    %190 = vector.load %arg9[%c0_66, %c0_67] : memref<8x128xf32, #tpu.memory_space<vmem>>, vector<8x128xf32>
    tpu.vector_store %arg9[%c0_66, %c0_67], %187 {strides = array<i32>} : memref<8x128xf32, #tpu.memory_space<vmem>>, vector<8x128xf32>,
    %c0_68 = arith.constant 0 : index
    %c0_69 = arith.constant 0 : index
    %191 = vector.load %arg10[%c0_68, %c0_69] : memref<8x128xi32, #tpu.memory_space<vmem>>, vector<8x128xi32>
    tpu.vector_store %arg10[%c0_68, %c0_69], %189 {strides = array<i32>} : memref<8x128xi32, #tpu.memory_space<vmem>>, vector<8x128xi32>,
    %c2_i32 = arith.constant 2 : i32
    %192 = arith.cmpi eq, %arg1, %c2_i32 : i32
    %193 = arith.extui %192 : i1 to i32
    %c0_i32_70 = arith.constant 0 : i32
    %194 = arith.cmpi ne, %193, %c0_i32_70 : i32
    scf.if %194 {
      %c0_71 = arith.constant 0 : index
      %c0_72 = arith.constant 0 : index
      %195 = vector.load %arg9[%c0_71, %c0_72] : memref<8x128xf32, #tpu.memory_space<vmem>>, vector<8x128xf32>
      %c0_73 = arith.constant 0 : index
      %c0_74 = arith.constant 0 : index
      %196 = vector.load %arg6[%c0_73, %c0_74] : memref<8x128xf32, #tpu.memory_space<vmem>>, vector<8x128xf32>
      tpu.vector_store %arg6[%c0_73, %c0_74], %195 {strides = array<i32>} : memref<8x128xf32, #tpu.memory_space<vmem>>, vector<8x128xf32>,
      %c0_75 = arith.constant 0 : index
      %c0_76 = arith.constant 0 : index
      %197 = vector.load %arg10[%c0_75, %c0_76] : memref<8x128xi32, #tpu.memory_space<vmem>>, vector<8x128xi32>
      %c0_77 = arith.constant 0 : index
      %c0_78 = arith.constant 0 : index
      %198 = vector.load %arg7[%c0_77, %c0_78] : memref<8x128xi32, #tpu.memory_space<vmem>>, vector<8x128xi32>
      tpu.vector_store %arg7[%c0_77, %c0_78], %197 {strides = array<i32>} : memref<8x128xi32, #tpu.memory_space<vmem>>, vector<8x128xi32>,
    } else {
    }
    return
  }
  func.func @transform_0(%arg0: i32, %arg1: i32) -> (i32, i32) {
    %c0_i32 = arith.constant 0 : i32
    %c0_i32_0 = arith.constant 0 : i32
    return %arg0, %c0_i32 : i32, i32
  }
  func.func @transform_1(%arg0: i32, %arg1: i32) -> (i32, i32) {
    %c0_i32 = arith.constant 0 : i32
    %c0_i32_0 = arith.constant 0 : i32
    %c0_i32_1 = arith.constant 0 : i32
    return %c0_i32, %c0_i32_0 : i32, i32
  }
  func.func @transform_2(%arg0: i32, %arg1: i32) -> (i32, i32) {
    %c0_i32 = arith.constant 0 : i32
    %c0_i32_0 = arith.constant 0 : i32
    %c0_i32_1 = arith.constant 0 : i32
    return %c0_i32, %c0_i32_0 : i32, i32
  }
  func.func @transform_3(%arg0: i32, %arg1: i32) -> (i32, i32) {
    %c0_i32 = arith.constant 0 : i32
    %c0_i32_0 = arith.constant 0 : i32
    return %c0_i32, %arg1 : i32, i32
  }
  func.func @transform_4(%arg0: i32, %arg1: i32) -> (i32, i32) {
    %c0_i32 = arith.constant 0 : i32
    %c0_i32_0 = arith.constant 0 : i32
    return %arg0, %c0_i32 : i32, i32
  }
  func.func @transform_5(%arg0: i32, %arg1: i32) -> (i32, i32) {
    %c0_i32 = arith.constant 0 : i32
    %c0_i32_0 = arith.constant 0 : i32
    return %arg0, %c0_i32 : i32, i32
  }
}

</mosaic_0001>

<bundles_post_ra>
// kernel: tpu_custom_call.1
= control target key start
LH: loop header
LB: loop body
LE: loop exit
PB: predicated region body
PF: predicated region fallthrough
CT: control target
= control target key end

     0   :  { %11 = vsyncpa [#allocation6], 0  ;;  %s1723_s0 = inlined_call_operand.hbm [shape: f32[8,32], index: 0, kind: input, shape index: {}]   ;;  %s1724_s1 = inlined_call_operand.hbm [shape: f32[32,32], index: 1, kind: input, shape index: {}]   ;;  %s1725_s2 = inlined_call_operand.vmem [shape: f32[1,32], index: 2, kind: input, shape index: {}]   ;;  %s1726_s3 = inlined_call_operand.hbm [shape: f32[32,384], index: 3, kind: input, shape index: {}]   ;;  %s1727_s4 = inlined_call_operand.hbm [shape: f32[8,128], index: 4, kind: output, shape index: {0}]   ;;  %s1728_s5 = inlined_call_operand.hbm [shape: s32[8,128], index: 5, kind: output, shape index: {1}]  }
   0x1   :  { %12 = vsyncpa [#allocation9], 0 }
   0x2   :  { %13 = vsyncpa [#allocation7], 0 }
   0x3   :  { %14 = vsyncpa [#allocation13], 0  ;;  %s1403_s18 = smov 0   ;;  %s1405_s19 = smov 0  }
   0x4   :  { %s1407_s20 = smov 0   ;;  %s1409_s21 = smov 0  }
   0x5   :  { %s1411_s22 = smov 0   ;;  %s1413_s23 = smov 0  }
   0x6 LB: > { %s1432_s24 = sadd.s32 4294967295, %s1357_s23   ;;  %p114_p0 = scmp.ne.s32.totalorder %s1345_s20, %s1341_s19  ;;  %s1357_s23 = sphi %s1413_s23, %s20_s23   ;;  %s1353_s22 = sphi %s1411_s22, %s1754_s22   ;;  %s1349_s21 = sphi %s1409_s21, %s1753_s21   ;;  %s1345_s20 = sphi %s1407_s20, %s1752_s20   ;;  %s1341_s19 = sphi %s1405_s19, %s1751_s19   ;;  %s1337_s18 = sphi %s1403_s18, %s1750_s18  }
   0x7   : > { %p115_p1 = scmp.eq.s32.totalorder %s1357_s23, 0  ;;  %p120_p2 = scmp.ne.s32.totalorder %s1341_s19, %s1337_s18 }
   0x8   : > { %p1729_p3 = scmp.eq.s32.totalorder %s1432_s24, 0  ;;  %p1010_p5 = scmp.ge.s32.totalorder %s1357_s23, 1 }
   0x9   : > { %p116_p4 = por %p115_p1, %p114_p0  ;;  %p183_p7 = scmp.lt.s32.totalorder %s1357_s23, 4 }
   0xa   : > { %p1443_p6 = por %p1729_p3, %p120_p2  ;;  %s1359_s28 = smov [#allocation5]  }
   0xb   : > { %p1448_p8 = pnand %p1010_p5, %p183_p7  ;;  %s198_s29 = sshll.u32 %s1359_s28, 4  ;;  %s199_s29 = int_to_ptr.vmem [resolvable:$true] %s198_s29 }
   0xc   : > { %s1735_s26 = scalar_select %p1443_p6, 1, 0 }
   0xd   : > { %s1736_s27 = scalar_select %p1448_p8, 1, 0 }
   0xe   : > { %p1082_p9 = pneg %p1448_p8  ;;  %p1095_p10 = scmp.lt.s32.totalorder %s1357_s23, 3 }
   0xf   : > { %s1360_s7 = smov [#allocation8]   ;;  %s1174_s9 = scalar_lea.vmem %s199_s29, 128 }
  0x10   : > { %p1457_p11 = pnand %p1082_p9, %p1729_p3  ;;  %p1461_p12 = pnand %p1095_p10, %p116_p4 }
  0x11   : > { %s208_s8 = sshll.u32 %s1360_s7, 4  ;;  %p1175_p0 = scmp.ne.s32.totalorder %s199_s29, %s1174_s9  ;;  %s209_s8 = int_to_ptr.vmem [resolvable:$true] %s208_s8 }
  0x12   : > { %p1165_p13 = pneg %p1457_p11  ;;  %p1182_p5 = scmp.lt.s32.totalorder %s199_s29, %s199_s29 }
  0x13   : > { %p1183_p7 = scmp.lt.s32.totalorder %s1174_s9, %s1174_s9 }
  0x14   : > { %p1177_p1 = pnand %p1175_p0, %p1165_p13 }
  0x15   : > { %p1184_p9 = por %p1183_p7, %p1182_p5 }
  0x16   : > { %p1178_p2 = pneg %p1177_p1 }
  0x18   : > { %p1185_p3 = pnand %p1184_p9, %p1178_p2 }
  0x1a   : > { %1188 = shalt.err (!%p1185_p3)
}
  0x1b   : > { %1085 = dma.hbm_to_vmem [thread:$0]  (!%p1457_p11), %s1723_s0, 128, %s199_s29, [#allocation6]  }
  0x1c   : > { %s1200_s12 = scalar_lea.vmem %s209_s8, 512  ;;  %p1208_p1 = scmp.lt.s32.totalorder %s209_s8, %s209_s8 }
  0x1d   : > { %p1201_p4 = scmp.ne.s32.totalorder %s209_s8, %s1200_s12  ;;  %p1209_p6 = scmp.lt.s32.totalorder %s1200_s12, %s1200_s12 }
  0x1f   : > { %p1203_p10 = pnand %p1201_p4, %p1165_p13  ;;  %p1210_p8 = por %p1209_p6, %p1208_p1 }
  0x21   : > { %p1204_p0 = pneg %p1203_p10 }
  0x23   : > { %p1211_p5 = pnand %p1210_p8, %p1204_p0 }
  0x25   : > { %1214 = shalt.err (!%p1211_p5)
}
  0x26   : > { %s1732_s13 = smov 128   ;;  %s1733_s14 = smov 8  }
  0x27   : > { %1088 = dma.hbm_to_vmem [thread:$0]  (!%p1457_p11), %s1724_s1, 512, %s209_s8, [#allocation9], %s1732_s13, %s1732_s13, %s1733_s14  }
  0x28   : > { %s225_s17 = sand.u32 1, %s1357_s23   ;;  %s29_s18 = sadd.s32 1, %s1353_s22 }
  0x29   : > { %p30_p3 = scmp.ge.s32.totalorder %s29_s18, 3  ;;  %s227_s28 = sand.u32 1, %s1345_s20  }
  0x2a   : > { %s1014_s29 = sshll.u32 %s227_s28, 5  ;;  %s1015_s7 = sshll.u32 %s1353_s22, 7 }
  0x2b   : > { %s1756_s18 = smov (%p30_p3, %s29_s18), 0  ;;  %s234_s30 = scalar_lea.hbm %s1726_s3, %s1015_s7 }
  0x2c   : > { %s104_s11 = ssub.s32 %s1353_s22, %s1756_s18  ;;  %s229_s12 = scalar_lea.vmem [#allocation10], %s1014_s29 }
  0x2d   : > { %s235_s25 = sshll.u32 %s229_s12, 4  ;;  %p105_p6 = scmp.eq.s32.totalorder %s104_s11, 0  ;;  %s236_s25 = int_to_ptr.vmem [resolvable:$true] %s235_s25 }
  0x2e   : > { %s1739_s8 = sadd.s32 1, %s1345_s20  ;;  %s226_s16 = scalar_lea.sflag [#allocation6], %s225_s17 }
  0x2f   : > { %s1500_s15 = scalar_select %p105_p6, %s1345_s20, %s1739_s8  }
  0x30   : > { %p1217_p8 = pneg %p1461_p12  ;;  %s1228_s28 = scalar_lea.vmem %s236_s25, 512 }
  0x31   : > { %p1229_p11 = scmp.ne.s32.totalorder %s236_s25, %s1228_s28  ;;  %s1363_s13 = smov [#allocation10]  }
  0x32   : > { %s1233_s14 = sshll.u32 %s1363_s13, 4  ;;  %s1234_s14 = int_to_ptr.vmem [resolvable:$false] %s1233_s14 }
  0x33   : > { %p1231_p13 = pnand %p1229_p11, %p1217_p8  ;;  %s1235_s9 = scalar_lea.vmem %s1234_s14, 1024 }
  0x34   : > { %p1236_p7 = scmp.lt.s32.totalorder %s236_s25, %s1234_s14  ;;  %p1237_p9 = scmp.lt.s32.totalorder %s1235_s9, %s1228_s28 }
  0x35   : > { %p1232_p2 = pneg %p1231_p13 }
  0x36   : > { %p1238_p4 = por %p1237_p9, %p1236_p7 }
  0x38   : > { %p1239_p10 = pnand %p1238_p4, %p1232_p2 }
  0x3a   : > { %1242 = shalt.err (!%p1239_p10)
}
  0x3b   : > { %s1364_s29 = smov 384   ;;  %s1740_s7 = smov 8  }
  0x3c   : > { %s1741_s17 = smov 128   ;;  %p1742_p0 = scmp.ne.s32.totalorder %s1736_s27, 0 }
  0x3d   : > { %1092 = dma.hbm_to_vmem [thread:$0]  (!%p1461_p12), %s234_s30, 512, %s236_s25, %s226_s16, %s1364_s29, %s1741_s17, %s1740_s7  }
  0x3e   : > { %247 = sbr.rel (%p1742_p0) target bundleno = 6576 (0x19b0), region = 36  ;;  %p1743_p1 = scmp.eq.s32.totalorder (!%p1742_p0), %s1432_s24, 0 }
  0x43   : > { %1316 = dma.done.wait (%p1743_p1), [#allocation6], 128   ;;  %p1744_p5 = pmov %p1743_p1 }
  0x44   : > { %p1745_p3 = pmov %p1743_p1 }
  0x45   : > { %1318 = vsyncadd (%p1744_p5), [#allocation6], 4294967168 }
  0x46   : > { %1320 = dma.done.wait (%p1745_p3), [#allocation9], 512   ;;  %p1746_p6 = pmov %p1743_p1 }
  0x47   : > { %s257_s6 = sand.u32 1, %s1432_s24   ;;  %s259_s25 = sand.u32 1, %s1341_s19  }
  0x48   : > { %1322 = vsyncadd (%p1746_p6), [#allocation9], 4294966784  ;;  %s1019_s13 = sshll.u32 %s259_s25, 5  ;;  %s258_s27 = scalar_lea.sflag [#allocation6], %s257_s6 }
  0x49   : > { %s1520_s14 = scalar_lea.vmem [#allocation10], %s1019_s13  ;;  %p1747_p12 = scmp.ne.s32.totalorder %s1735_s26, 0 }
  0x4b   : > { %1324 = dma.done.wait (%p1747_p12), %s258_s27, 512  }
  0x4c   : > { %1326 = vsyncadd (%p1747_p12), %s258_s27, 4294966784  ;;  %p1020_p8 = scmp.ne.s32.totalorder %s1349_s21, 0 }
  0x4e   : > { %286 = sbr.rel (%p1020_p8) target bundleno = 288 (0x120), region = 52 }
  0x53   : > { %v291_v0 = vld [vmem:[#allocation8 + $0x18] sm:$0xff]  ;;  %v1365_v1 = vmov 0.0   ;;  %v290_v2 = vld [vmem:[#allocation8 + $0x10] sm:$0xff]  ;;  %vm1366_vm0 = vmmov 0   ;;  %v289_v3 = vld [vmem:[#allocation8 + $0x8] sm:$0xff]  ;;  %vm299_vm1 = vcmask 261120  }
  0x54   : > { %1042 = vmatprep.subr.mxu0 %v1365_v1  ;;  %1050 = vmatprep.mubr.msk.f32.mxu0 %vm1366_vm0, %v1365_v1  ;;  %v288_v4 = vld [vmem:[#allocation8] sm:$0xff]  ;;  %v287_v5 = vld [vmem:[#allocation5] sm:$0xff]  ;;  %v1367_v6 = vmov -inf   ;;  %v1368_v7 = vmov 0  }
  0x55   : > { %1043 = vmatpush3.msra.mxu0 %v291_v0  ;;  %374 = vst [vmem:[#allocation3] sm:$0xff] %v1367_v6  ;;  %375 = vst [vmem:[#allocation4] sm:$0xff] %v1368_v7  ;;  %v1021_v8 = vld [vmem:[%s1725_s2] ss:$0 sm:$0xff] }
  0x56   : > { %1044 = vmatprep.subr.mxu0 %v1365_v1 }
  0x57   : > { %1045 = vmatpush3.msra.mxu0 %v290_v2 }
  0x58   : > { %1046 = vmatprep.subr.mxu0 %v1365_v1 }
  0x59   : > { %1047 = vmatpush3.msra.mxu0 %v289_v3 }
  0x5a   : > { %1048 = vmatprep.subr.mxu0 %v1365_v1 }
  0x5b   : > { %1049 = vmatpush3.msra.mxu0 %v288_v4 }
  0x5c   : > { %1051 = vmatmul.mubr.msk.f32.vlgmr.msra.gmra.mxu0 %vm299_vm1, %v287_v5 }
 0x11c   : > { %v369_v9 = vpop.f32.mrf.mxu0 }
 0x11d   : > { %v370_v10 = vadd.f32 %v1021_v8, %v369_v9 }
 0x11e   : > { %v1052_v11 = vpop.f32.mrf.mxu0 }
 0x11f   : > { %373 = vst.msk [vmem:[#allocation2] sm:$0xff] %vm299_vm1, %v370_v10 }
 0x120 PF: > { %v379_v12 = vld [vmem:[%s1520_s14 + $0x18] sm:$0xff]  ;;  %v1369_v13 = vmov 0.0   ;;  %v378_v14 = vld [vmem:[%s1520_s14 + $0x10] sm:$0xff]  ;;  %vm1370_vm2 = vmmov 0   ;;  %v377_v15 = vld [vmem:[%s1520_s14 + $0x8] sm:$0xff]  ;;  %vm381_vm3 = vcmask 261120   ;;  %v455_v18 = vlaneseq }
 0x121   : > { %1053 = vmatprep.subr.mxu0 %v1369_v13  ;;  %1061 = vmatprep.mubr.msk.f32.mxu0 %vm1370_vm2, %v1369_v13  ;;  %v376_v16 = vld [vmem:[%s1520_s14] sm:$0xff]  ;;  %s1024_s30 = sshll.u32 %s1349_s21, 7  ;;  %v464_v23 = vld [vmem:[#allocation3] sm:$0xff]  ;;  %v1537_v28 = vld [vmem:[#allocation4] sm:$0xff]  ;;  %p1025_p11 = scmp.ne.s32.totalorder %s1349_s21, 2 }
 0x122   : > { %1054 = vmatpush3.msra.mxu0 %v379_v12  ;;  %v456_v19 = vand.u32 127, %v455_v18  ;;  %v462_v20 = vstv %s1024_s30  ;;  %s458_s11 = ssub.s32 300, %s1024_s30 }
 0x123   : > { %1055 = vmatprep.subr.mxu0 %v1369_v13  ;;  %v459_v22 = vstv %s458_s11 }
 0x124   : > { %1056 = vmatpush3.msra.mxu0 %v378_v14  ;;  %v1535_v21 = vadd.s32 %v462_v20, %v456_v19  ;;  %vm460_vm4 = vcmp.lt.s32.totalorder %v456_v19, %v459_v22 }
 0x125   : > { %1057 = vmatprep.subr.mxu0 %v1369_v13 }
 0x126   : > { %1058 = vmatpush3.msra.mxu0 %v377_v15  ;;  %v380_v17 = vld [vmem:[#allocation2] sm:$0xff] }
 0x127   : > { %1059 = vmatprep.subr.mxu0 %v1369_v13 }
 0x128   : > { %1060 = vmatpush3.msra.mxu0 %v376_v16 }
 0x129   : > { %1062 = vmatmul.mubr.msk.f32.vlgmr.msra.gmra.mxu0 %vm381_vm3, %v380_v17 }
 0x1e9   : > { %v451_v24 = vpop.f32.mrf.mxu0 }
 0x1ea   : > { %v461_v25 = vsel %vm460_vm4, %v451_v24, -inf }
 0x1eb   : > { %v1063_v26 = vpop.f32.mrf.mxu0  ;;  %v466_v27 = vmax.f32 %v461_v25, %v464_v23 }
 0x1ed   : > { %467 = vmax.xlane.f32.xlu0 %v466_v27 }
 0x276   : > { %v1539_v29 = vpop.xlane.xlu0 %467 }
 0x277   : > { %vm469_vm5 = vcmp.eq.f32.partialorder %v461_v25, %v1539_v29  ;;  %vm470_vm6 = vcmp.eq.f32.partialorder %v464_v23, %v1539_v29 }
 0x278   : > { %v471_v30 = vsel %vm469_vm5, %v1535_v21, 2147483647  ;;  %v472_v31 = vsel %vm470_vm6, %v1537_v28, 2147483647  ;;  %vm840_vm5 = vcmask 7168   ;;  %vm842_vm6 = vcmask 15360  }
 0x279   : > { %vm473_vm7 = vcmp.lt.s32.totalorder %v471_v30, %v472_v31 }
 0x27a   : > { %v474_v32 = vsel %vm473_vm7, %v471_v30, %v472_v31 }
 0x27b   : > { %v476_v33 = vshra.s32 %v474_v32, 16  ;;  %v475_v35 = vand.u32 65535, %v474_v32 }
 0x27d   : > { %v478_v34 = vcvt.s32.f32 %v476_v33  ;;  %v477_v37 = vcvt.s32.f32 %v475_v35 }
 0x27f   : > { %479 = vmin.xlane.f32.xlu0 %v478_v34 }
 0x308   : > { %v480_v36 = vpop.xlane.xlu0 %479 }
 0x309   : > { %vm481_vm8 = vcmp.eq.f32.partialorder %v478_v34, %v480_v36  ;;  %v486_v39 = vcvt.f32.s32 %v480_v36 }
 0x30a   : > { %v482_v38 = vsel %vm481_vm8, %v477_v37, inf }
 0x30b   : > { %483 = vmin.xlane.f32.xlu1 %v482_v38  ;;  %v487_v41 = vshll.u32 %v486_v39, 16 }
 0x394   : > { %v484_v40 = vpop.xlane.xlu1 %483 }
 0x395   : > { %v485_v42 = vcvt.f32.s32 %v484_v40 }
 0x397   : > { %v488_v43 = vadd.s32 %v487_v41, %v485_v42 }
 0x399   : > { %vm489_vm9 = vcmp.eq.s32.totalorder %v1535_v21, %v488_v43  ;;  %vm490_vm10 = vcmp.eq.s32.totalorder %v1537_v28, %v488_v43 }
 0x39a   : > { %v491_v44 = vsel %vm489_vm9, -inf, %v461_v25  ;;  %v492_v45 = vsel %vm490_vm10, -inf, %v464_v23 }
 0x39b   : > { %v493_v46 = vmax.f32 %v491_v44, %v492_v45 }
 0x39d   : > { %494 = vmax.xlane.f32.xlu1 %v493_v46 }
 0x426   : > { %v1547_v47 = vpop.xlane.xlu1 %494 }
 0x427   : > { %vm496_vm11 = vcmp.eq.f32.partialorder %v491_v44, %v1547_v47  ;;  %vm497_vm12 = vcmp.eq.f32.partialorder %v492_v45, %v1547_v47 }
 0x428   : > { %v498_v48 = vsel %vm496_vm11, %v1535_v21, 2147483647  ;;  %v499_v49 = vsel %vm497_vm12, %v1537_v28, 2147483647 }
 0x429   : > { %vm500_vm13 = vcmp.lt.s32.totalorder %v498_v48, %v499_v49 }
 0x42a   : > { %v501_v50 = vsel %vm500_vm13, %v498_v48, %v499_v49  ;;  %vm844_vm13 = vcmask 23552  }
 0x42b   : > { %v503_v51 = vshra.s32 %v501_v50, 16  ;;  %v502_v53 = vand.u32 65535, %v501_v50 }
 0x42d   : > { %v505_v52 = vcvt.s32.f32 %v503_v51  ;;  %v504_v55 = vcvt.s32.f32 %v502_v53 }
 0x42f   : > { %506 = vmin.xlane.f32.xlu0 %v505_v52 }
 0x4b8   : > { %v507_v54 = vpop.xlane.xlu0 %506 }
 0x4b9   : > { %vm508_vm14 = vcmp.eq.f32.partialorder %v505_v52, %v507_v54  ;;  %v513_v57 = vcvt.f32.s32 %v507_v54 }
 0x4ba   : > { %v509_v56 = vsel %vm508_vm14, %v504_v55, inf }
 0x4bb   : > { %510 = vmin.xlane.f32.xlu1 %v509_v56  ;;  %v514_v59 = vshll.u32 %v513_v57, 16 }
 0x544   : > { %v511_v58 = vpop.xlane.xlu1 %510 }
 0x545   : > { %v512_v60 = vcvt.f32.s32 %v511_v58 }
 0x547   : > { %v515_v61 = vadd.s32 %v514_v59, %v512_v60 }
 0x549   : > { %vm516_vm15 = vcmp.eq.s32.totalorder %v1535_v21, %v515_v61  ;;  %vm517_vm0 = vcmp.eq.s32.totalorder %v1537_v28, %v515_v61  ;;  %v866_v16 = vsel %vm840_vm5, %v488_v43, %v515_v61 }
 0x54a   : > { %v518_v62 = vsel %vm516_vm15, -inf, %v491_v44  ;;  %v519_v63 = vsel %vm517_vm0, -inf, %v492_v45 }
 0x54b   : > { %v520_v0 = vmax.f32 %v518_v62, %v519_v63 }
 0x54d   : > { %521 = vmax.xlane.f32.xlu0 %v520_v0 }
 0x5d6   : > { %v1555_v1 = vpop.xlane.xlu0 %521 }
 0x5d7   : > { %vm523_vm1 = vcmp.eq.f32.partialorder %v518_v62, %v1555_v1  ;;  %vm524_vm2 = vcmp.eq.f32.partialorder %v519_v63, %v1555_v1 }
 0x5d8   : > { %v525_v2 = vsel %vm523_vm1, %v1535_v21, 2147483647  ;;  %v526_v3 = vsel %vm524_vm2, %v1537_v28, 2147483647 }
 0x5d9   : > { %vm527_vm3 = vcmp.lt.s32.totalorder %v525_v2, %v526_v3 }
 0x5da   : > { %v528_v4 = vsel %vm527_vm3, %v525_v2, %v526_v3 }
 0x5db   : > { %v530_v5 = vshra.s32 %v528_v4, 16  ;;  %v529_v7 = vand.u32 65535, %v528_v4 }
 0x5dd   : > { %v532_v6 = vcvt.s32.f32 %v530_v5  ;;  %v531_v9 = vcvt.s32.f32 %v529_v7 }
 0x5df   : > { %533 = vmin.xlane.f32.xlu1 %v532_v6 }
 0x668   : > { %v534_v8 = vpop.xlane.xlu1 %533 }
 0x669   : > { %vm535_vm4 = vcmp.eq.f32.partialorder %v532_v6, %v534_v8  ;;  %v540_v11 = vcvt.f32.s32 %v534_v8 }
 0x66a   : > { %v536_v10 = vsel %vm535_vm4, %v531_v9, inf  ;;  %vm846_vm4 = vcmask 31744  }
 0x66b   : > { %537 = vmin.xlane.f32.xlu0 %v536_v10  ;;  %v541_v13 = vshll.u32 %v540_v11, 16 }
 0x6f4   : > { %v538_v12 = vpop.xlane.xlu0 %537 }
 0x6f5   : > { %v539_v14 = vcvt.f32.s32 %v538_v12 }
 0x6f7   : > { %v542_v15 = vadd.s32 %v541_v13, %v539_v14 }
 0x6f9   : > { %v867_v17 = vsel %vm842_vm6, %v866_v16, %v542_v15  ;;  %vm543_vm7 = vcmp.eq.s32.totalorder %v1535_v21, %v542_v15  ;;  %vm544_vm8 = vcmp.eq.s32.totalorder %v1537_v28, %v542_v15 }
 0x6fa   : > { %v545_v18 = vsel %vm543_vm7, -inf, %v518_v62  ;;  %v546_v19 = vsel %vm544_vm8, -inf, %v519_v63 }
 0x6fb   : > { %v547_v20 = vmax.f32 %v545_v18, %v546_v19 }
 0x6fd   : > { %548 = vmax.xlane.f32.xlu1 %v547_v20 }
 0x786   : > { %v1565_v22 = vpop.xlane.xlu1 %548 }
 0x787   : > { %vm550_vm9 = vcmp.eq.f32.partialorder %v545_v18, %v1565_v22  ;;  %vm551_vm10 = vcmp.eq.f32.partialorder %v546_v19, %v1565_v22 }
 0x788   : > { %v552_v23 = vsel %vm550_vm9, %v1535_v21, 2147483647  ;;  %v553_v24 = vsel %vm551_vm10, %v1537_v28, 2147483647 }
 0x789   : > { %vm554_vm11 = vcmp.lt.s32.totalorder %v552_v23, %v553_v24 }
 0x78a   : > { %v555_v25 = vsel %vm554_vm11, %v552_v23, %v553_v24 }
 0x78b   : > { %v557_v26 = vshra.s32 %v555_v25, 16  ;;  %v556_v30 = vand.u32 65535, %v555_v25 }
 0x78d   : > { %v559_v27 = vcvt.s32.f32 %v557_v26  ;;  %v558_v32 = vcvt.s32.f32 %v556_v30 }
 0x78f   : > { %560 = vmin.xlane.f32.xlu0 %v559_v27 }
 0x818   : > { %v561_v31 = vpop.xlane.xlu0 %560 }
 0x819   : > { %vm562_vm12 = vcmp.eq.f32.partialorder %v559_v27, %v561_v31  ;;  %v567_v34 = vcvt.f32.s32 %v561_v31 }
 0x81a   : > { %v563_v33 = vsel %vm562_vm12, %v558_v32, inf }
 0x81b   : > { %564 = vmin.xlane.f32.xlu1 %v563_v33  ;;  %v568_v36 = vshll.u32 %v567_v34, 16 }
 0x8a4   : > { %v565_v35 = vpop.xlane.xlu1 %564 }
 0x8a5   : > { %v566_v37 = vcvt.f32.s32 %v565_v35 }
 0x8a7   : > { %v569_v38 = vadd.s32 %v568_v36, %v566_v37 }
 0x8a9   : > { %v868_v39 = vsel %vm844_vm13, %v867_v17, %v569_v38  ;;  %vm570_vm14 = vcmp.eq.s32.totalorder %v1535_v21, %v569_v38  ;;  %vm571_vm15 = vcmp.eq.s32.totalorder %v1537_v28, %v569_v38 }
 0x8aa   : > { %v572_v40 = vsel %vm570_vm14, -inf, %v545_v18  ;;  %v573_v41 = vsel %vm571_vm15, -inf, %v546_v19  ;;  %vm848_vm14 = vcmask 39936  }
 0x8ab   : > { %v574_v42 = vmax.f32 %v572_v40, %v573_v41 }
 0x8ad   : > { %575 = vmax.xlane.f32.xlu0 %v574_v42 }
 0x936   : > { %v1574_v43 = vpop.xlane.xlu0 %575 }
 0x937   : > { %vm577_vm0 = vcmp.eq.f32.partialorder %v572_v40, %v1574_v43  ;;  %vm578_vm1 = vcmp.eq.f32.partialorder %v573_v41, %v1574_v43 }
 0x938   : > { %v579_v44 = vsel %vm577_vm0, %v1535_v21, 2147483647  ;;  %v580_v45 = vsel %vm578_vm1, %v1537_v28, 2147483647 }
 0x939   : > { %vm581_vm2 = vcmp.lt.s32.totalorder %v579_v44, %v580_v45 }
 0x93a   : > { %v582_v46 = vsel %vm581_vm2, %v579_v44, %v580_v45 }
 0x93b   : > { %v584_v48 = vshra.s32 %v582_v46, 16  ;;  %v583_v50 = vand.u32 65535, %v582_v46 }
 0x93d   : > { %v586_v49 = vcvt.s32.f32 %v584_v48  ;;  %v585_v52 = vcvt.s32.f32 %v583_v50 }
 0x93f   : > { %587 = vmin.xlane.f32.xlu1 %v586_v49 }
 0x9c8   : > { %v588_v51 = vpop.xlane.xlu1 %587 }
 0x9c9   : > { %vm589_vm3 = vcmp.eq.f32.partialorder %v586_v49, %v588_v51  ;;  %v594_v54 = vcvt.f32.s32 %v588_v51 }
 0x9ca   : > { %v590_v53 = vsel %vm589_vm3, %v585_v52, inf }
 0x9cb   : > { %591 = vmin.xlane.f32.xlu0 %v590_v53  ;;  %v595_v56 = vshll.u32 %v594_v54, 16 }
 0xa54   : > { %v592_v55 = vpop.xlane.xlu0 %591 }
 0xa55   : > { %v593_v57 = vcvt.f32.s32 %v592_v55 }
 0xa57   : > { %v596_v58 = vadd.s32 %v595_v56, %v593_v57 }
 0xa59   : > { %v869_v59 = vsel %vm846_vm4, %v868_v39, %v596_v58  ;;  %vm597_vm7 = vcmp.eq.s32.totalorder %v1535_v21, %v596_v58  ;;  %vm598_vm8 = vcmp.eq.s32.totalorder %v1537_v28, %v596_v58 }
 0xa5a   : > { %v599_v60 = vsel %vm597_vm7, -inf, %v572_v40  ;;  %v600_v61 = vsel %vm598_vm8, -inf, %v573_v41  ;;  %vm850_vm8 = vcmask 48128  }
 0xa5b   : > { %v601_v62 = vmax.f32 %v599_v60, %v600_v61 }
 0xa5d   : > { %602 = vmax.xlane.f32.xlu1 %v601_v62 }
 0xae6   : > { %v1583_v63 = vpop.xlane.xlu1 %602 }
 0xae7   : > { %vm604_vm9 = vcmp.eq.f32.partialorder %v599_v60, %v1583_v63  ;;  %vm605_vm10 = vcmp.eq.f32.partialorder %v600_v61, %v1583_v63 }
 0xae8   : > { %v606_v0 = vsel %vm604_vm9, %v1535_v21, 2147483647  ;;  %v607_v2 = vsel %vm605_vm10, %v1537_v28, 2147483647 }
 0xae9   : > { %vm608_vm11 = vcmp.lt.s32.totalorder %v606_v0, %v607_v2 }
 0xaea   : > { %v609_v3 = vsel %vm608_vm11, %v606_v0, %v607_v2 }
 0xaeb   : > { %v611_v4 = vshra.s32 %v609_v3, 16  ;;  %v610_v6 = vand.u32 65535, %v609_v3 }
 0xaed   : > { %v613_v5 = vcvt.s32.f32 %v611_v4  ;;  %v612_v8 = vcvt.s32.f32 %v610_v6 }
 0xaef   : > { %614 = vmin.xlane.f32.xlu0 %v613_v5 }
 0xb78   : > { %v615_v7 = vpop.xlane.xlu0 %614 }
 0xb79   : > { %vm616_vm12 = vcmp.eq.f32.partialorder %v613_v5, %v615_v7  ;;  %v621_v10 = vcvt.f32.s32 %v615_v7 }
 0xb7a   : > { %v617_v9 = vsel %vm616_vm12, %v612_v8, inf }
 0xb7b   : > { %618 = vmin.xlane.f32.xlu1 %v617_v9  ;;  %v622_v12 = vshll.u32 %v621_v10, 16 }
 0xc04   : > { %v619_v11 = vpop.xlane.xlu1 %618 }
 0xc05   : > { %v620_v13 = vcvt.f32.s32 %v619_v11 }
 0xc07   : > { %v623_v14 = vadd.s32 %v622_v12, %v620_v13 }
 0xc09   : > { %v870_v15 = vsel %vm848_vm14, %v869_v59, %v623_v14  ;;  %vm624_vm15 = vcmp.eq.s32.totalorder %v1535_v21, %v623_v14  ;;  %vm625_vm0 = vcmp.eq.s32.totalorder %v1537_v28, %v623_v14 }
 0xc0a   : > { %v626_v16 = vsel %vm624_vm15, -inf, %v599_v60  ;;  %v627_v17 = vsel %vm625_vm0, -inf, %v600_v61 }
 0xc0b   : > { %v628_v18 = vmax.f32 %v626_v16, %v627_v17 }
 0xc0d   : > { %629 = vmax.xlane.f32.xlu0 %v628_v18 }
 0xc96   : > { %v1592_v19 = vpop.xlane.xlu0 %629 }
 0xc97   : > { %vm631_vm1 = vcmp.eq.f32.partialorder %v626_v16, %v1592_v19  ;;  %vm632_vm2 = vcmp.eq.f32.partialorder %v627_v17, %v1592_v19 }
 0xc98   : > { %v633_v20 = vsel %vm631_vm1, %v1535_v21, 2147483647  ;;  %v634_v23 = vsel %vm632_vm2, %v1537_v28, 2147483647  ;;  %vm852_vm1 = vcmask 56320  }
 0xc99   : > { %vm635_vm3 = vcmp.lt.s32.totalorder %v633_v20, %v634_v23 }
 0xc9a   : > { %v636_v24 = vsel %vm635_vm3, %v633_v20, %v634_v23 }
 0xc9b   : > { %v638_v25 = vshra.s32 %v636_v24, 16  ;;  %v637_v27 = vand.u32 65535, %v636_v24 }
 0xc9d   : > { %v640_v26 = vcvt.s32.f32 %v638_v25  ;;  %v639_v31 = vcvt.s32.f32 %v637_v27 }
 0xc9f   : > { %641 = vmin.xlane.f32.xlu1 %v640_v26 }
 0xd28   : > { %v642_v30 = vpop.xlane.xlu1 %641 }
 0xd29   : > { %vm643_vm7 = vcmp.eq.f32.partialorder %v640_v26, %v642_v30  ;;  %v648_v33 = vcvt.f32.s32 %v642_v30 }
 0xd2a   : > { %v644_v32 = vsel %vm643_vm7, %v639_v31, inf }
 0xd2b   : > { %645 = vmin.xlane.f32.xlu0 %v644_v32  ;;  %v649_v35 = vshll.u32 %v648_v33, 16 }
 0xdb4   : > { %v646_v34 = vpop.xlane.xlu0 %645 }
 0xdb5   : > { %v647_v36 = vcvt.f32.s32 %v646_v34 }
 0xdb7   : > { %v650_v37 = vadd.s32 %v649_v35, %v647_v36 }
 0xdb9   : > { %v871_v38 = vsel %vm850_vm8, %v870_v15, %v650_v37  ;;  %vm651_vm9 = vcmp.eq.s32.totalorder %v1535_v21, %v650_v37  ;;  %vm652_vm10 = vcmp.eq.s32.totalorder %v1537_v28, %v650_v37 }
 0xdba   : > { %v653_v39 = vsel %vm651_vm9, -inf, %v626_v16  ;;  %v654_v40 = vsel %vm652_vm10, -inf, %v627_v17 }
 0xdbb   : > { %v655_v41 = vmax.f32 %v653_v39, %v654_v40 }
 0xdbd   : > { %656 = vmax.xlane.f32.xlu1 %v655_v41 }
 0xe46   : > { %v1601_v42 = vpop.xlane.xlu1 %656 }
 0xe47   : > { %vm658_vm11 = vcmp.eq.f32.partialorder %v653_v39, %v1601_v42  ;;  %vm659_vm12 = vcmp.eq.f32.partialorder %v654_v40, %v1601_v42 }
 0xe48   : > { %v660_v44 = vsel %vm658_vm11, %v1535_v21, 2147483647  ;;  %v661_v45 = vsel %vm659_vm12, %v1537_v28, 2147483647  ;;  %vm854_vm12 = vcmask 64512  }
 0xe49   : > { %vm662_vm15 = vcmp.lt.s32.totalorder %v660_v44, %v661_v45 }
 0xe4a   : > { %v663_v46 = vsel %vm662_vm15, %v660_v44, %v661_v45 }
 0xe4b   : > { %v665_v48 = vshra.s32 %v663_v46, 16  ;;  %v664_v50 = vand.u32 65535, %v663_v46 }
 0xe4d   : > { %v667_v49 = vcvt.s32.f32 %v665_v48  ;;  %v666_v52 = vcvt.s32.f32 %v664_v50 }
 0xe4f   : > { %668 = vmin.xlane.f32.xlu0 %v667_v49 }
 0xed8   : > { %v669_v51 = vpop.xlane.xlu0 %668 }
 0xed9   : > { %vm670_vm0 = vcmp.eq.f32.partialorder %v667_v49, %v669_v51  ;;  %v675_v54 = vcvt.f32.s32 %v669_v51 }
 0xeda   : > { %v671_v53 = vsel %vm670_vm0, %v666_v52, inf }
 0xedb   : > { %672 = vmin.xlane.f32.xlu1 %v671_v53  ;;  %v676_v56 = vshll.u32 %v675_v54, 16 }
 0xf64   : > { %v673_v55 = vpop.xlane.xlu1 %672 }
 0xf65   : > { %v674_v57 = vcvt.f32.s32 %v673_v55 }
 0xf67   : > { %v677_v58 = vadd.s32 %v676_v56, %v674_v57 }
 0xf69   : > { %v872_v59 = vsel %vm852_vm1, %v871_v38, %v677_v58  ;;  %vm678_vm2 = vcmp.eq.s32.totalorder %v1535_v21, %v677_v58  ;;  %vm679_vm3 = vcmp.eq.s32.totalorder %v1537_v28, %v677_v58 }
 0xf6a   : > { %v680_v60 = vsel %vm678_vm2, -inf, %v653_v39  ;;  %v681_v61 = vsel %vm679_vm3, -inf, %v654_v40 }
 0xf6b   : > { %v682_v62 = vmax.f32 %v680_v60, %v681_v61 }
 0xf6d   : > { %683 = vmax.xlane.f32.xlu0 %v682_v62 }
 0xff6   : > { %v1610_v0 = vpop.xlane.xlu0 %683 }
 0xff7   : > { %vm685_vm7 = vcmp.eq.f32.partialorder %v680_v60, %v1610_v0  ;;  %vm686_vm9 = vcmp.eq.f32.partialorder %v681_v61, %v1610_v0 }
 0xff8   : > { %v687_v2 = vsel %vm685_vm7, %v1535_v21, 2147483647  ;;  %v688_v3 = vsel %vm686_vm9, %v1537_v28, 2147483647 }
 0xff9   : > { %vm689_vm10 = vcmp.lt.s32.totalorder %v687_v2, %v688_v3 }
 0xffa   : > { %v690_v4 = vsel %vm689_vm10, %v687_v2, %v688_v3  ;;  %vm856_vm10 = vcmask 72704  }
 0xffb   : > { %v692_v5 = vshra.s32 %v690_v4, 16  ;;  %v691_v7 = vand.u32 65535, %v690_v4 }
 0xffd   : > { %v694_v6 = vcvt.s32.f32 %v692_v5  ;;  %v693_v9 = vcvt.s32.f32 %v691_v7 }
 0xfff   : > { %695 = vmin.xlane.f32.xlu1 %v694_v6 }
0x1088   : > { %v696_v8 = vpop.xlane.xlu1 %695 }
0x1089   : > { %vm697_vm11 = vcmp.eq.f32.partialorder %v694_v6, %v696_v8  ;;  %v702_v11 = vcvt.f32.s32 %v696_v8 }
0x108a   : > { %v698_v10 = vsel %vm697_vm11, %v693_v9, inf }
0x108b   : > { %699 = vmin.xlane.f32.xlu0 %v698_v10  ;;  %v703_v13 = vshll.u32 %v702_v11, 16 }
0x1114   : > { %v700_v12 = vpop.xlane.xlu0 %699 }
0x1115   : > { %v701_v14 = vcvt.f32.s32 %v700_v12 }
0x1117   : > { %v704_v15 = vadd.s32 %v703_v13, %v701_v14 }
0x1119   : > { %v873_v16 = vsel %vm854_vm12, %v872_v59, %v704_v15  ;;  %vm705_vm15 = vcmp.eq.s32.totalorder %v1535_v21, %v704_v15  ;;  %vm706_vm0 = vcmp.eq.s32.totalorder %v1537_v28, %v704_v15 }
0x111a   : > { %v707_v17 = vsel %vm705_vm15, -inf, %v680_v60  ;;  %v708_v18 = vsel %vm706_vm0, -inf, %v681_v61 }
0x111b   : > { %v709_v20 = vmax.f32 %v707_v17, %v708_v18 }
0x111d   : > { %710 = vmax.xlane.f32.xlu1 %v709_v20 }
0x11a6   : > { %v1619_v23 = vpop.xlane.xlu1 %710 }
0x11a7   : > { %vm712_vm2 = vcmp.eq.f32.partialorder %v707_v17, %v1619_v23  ;;  %vm713_vm3 = vcmp.eq.f32.partialorder %v708_v18, %v1619_v23 }
0x11a8   : > { %v714_v24 = vsel %vm712_vm2, %v1535_v21, 2147483647  ;;  %v715_v25 = vsel %vm713_vm3, %v1537_v28, 2147483647 }
0x11a9   : > { %vm716_vm7 = vcmp.lt.s32.totalorder %v714_v24, %v715_v25 }
0x11aa   : > { %v717_v26 = vsel %vm716_vm7, %v714_v24, %v715_v25 }
0x11ab   : > { %v719_v27 = vshra.s32 %v717_v26, 16  ;;  %v718_v31 = vand.u32 65535, %v717_v26 }
0x11ad   : > { %v721_v30 = vcvt.s32.f32 %v719_v27  ;;  %v720_v33 = vcvt.s32.f32 %v718_v31 }
0x11af   : > { %722 = vmin.xlane.f32.xlu0 %v721_v30 }
0x1238   : > { %v723_v32 = vpop.xlane.xlu0 %722 }
0x1239   : > { %vm724_vm9 = vcmp.eq.f32.partialorder %v721_v30, %v723_v32  ;;  %v729_v35 = vcvt.f32.s32 %v723_v32 }
0x123a   : > { %v725_v34 = vsel %vm724_vm9, %v720_v33, inf  ;;  %vm858_vm9 = vcmask 80896  }
0x123b   : > { %726 = vmin.xlane.f32.xlu1 %v725_v34  ;;  %v730_v37 = vshll.u32 %v729_v35, 16 }
0x12c4   : > { %v727_v36 = vpop.xlane.xlu1 %726 }
0x12c5   : > { %v728_v38 = vcvt.f32.s32 %v727_v36 }
0x12c7   : > { %v731_v39 = vadd.s32 %v730_v37, %v728_v38 }
0x12c9   : > { %v874_v40 = vsel %vm856_vm10, %v873_v16, %v731_v39  ;;  %vm732_vm11 = vcmp.eq.s32.totalorder %v1535_v21, %v731_v39  ;;  %vm733_vm15 = vcmp.eq.s32.totalorder %v1537_v28, %v731_v39 }
0x12ca   : > { %v734_v41 = vsel %vm732_vm11, -inf, %v707_v17  ;;  %v735_v44 = vsel %vm733_vm15, -inf, %v708_v18 }
0x12cb   : > { %v736_v45 = vmax.f32 %v734_v41, %v735_v44 }
0x12cd   : > { %737 = vmax.xlane.f32.xlu0 %v736_v45 }
0x1356   : > { %v1628_v46 = vpop.xlane.xlu0 %737 }
0x1357   : > { %vm739_vm0 = vcmp.eq.f32.partialorder %v734_v41, %v1628_v46  ;;  %vm740_vm2 = vcmp.eq.f32.partialorder %v735_v44, %v1628_v46 }
0x1358   : > { %v741_v48 = vsel %vm739_vm0, %v1535_v21, 2147483647  ;;  %v742_v49 = vsel %vm740_vm2, %v1537_v28, 2147483647 }
0x1359   : > { %vm743_vm3 = vcmp.lt.s32.totalorder %v741_v48, %v742_v49 }
0x135a   : > { %v744_v50 = vsel %vm743_vm3, %v741_v48, %v742_v49 }
0x135b   : > { %v746_v51 = vshra.s32 %v744_v50, 16  ;;  %v745_v53 = vand.u32 65535, %v744_v50 }
0x135d   : > { %v748_v52 = vcvt.s32.f32 %v746_v51  ;;  %v747_v55 = vcvt.s32.f32 %v745_v53  ;;  %v841_v53 = vsel %vm840_vm5, %v1539_v29, %v1547_v47  ;;  %vm864_vm5 = vcmask 105472  }
0x135f   : > { %749 = vmin.xlane.f32.xlu1 %v748_v52 }
0x13e8   : > { %v750_v54 = vpop.xlane.xlu1 %749 }
0x13e9   : > { %vm751_vm7 = vcmp.eq.f32.partialorder %v748_v52, %v750_v54  ;;  %v756_v57 = vcvt.f32.s32 %v750_v54  ;;  %v843_v54 = vsel %vm842_vm6, %v841_v53, %v1555_v1  ;;  %vm1748_vm6 = vcmask 89088  }
0x13ea   : > { %v752_v56 = vsel %vm751_vm7, %v747_v55, inf  ;;  %v845_v55 = vsel %vm844_vm13, %v843_v54, %v1565_v22  ;;  %vm879_vm13 = vcmask 113664  }
0x13eb   : > { %753 = vmin.xlane.f32.xlu0 %v752_v56  ;;  %v757_v59 = vshll.u32 %v756_v57, 16  ;;  %v847_v56 = vsel %vm846_vm4, %v845_v55, %v1574_v43 }
0x13ec   : > { %v849_v57 = vsel %vm848_vm14, %v847_v56, %v1583_v63 }
0x1474   : > { %v754_v58 = vpop.xlane.xlu0 %753 }
0x1475   : > { %v755_v60 = vcvt.f32.s32 %v754_v58  ;;  %v851_v58 = vsel %vm850_vm8, %v849_v57, %v1592_v19 }
0x1477   : > { %v758_v61 = vadd.s32 %v757_v59, %v755_v60  ;;  %v853_v59 = vsel %vm852_vm1, %v851_v58, %v1601_v42 }
0x1478   : > { %v855_v29 = vsel %vm854_vm12, %v853_v59, %v1610_v0 }
0x1479   : > { %v875_v62 = vsel %vm858_vm9, %v874_v40, %v758_v61  ;;  %vm759_vm11 = vcmp.eq.s32.totalorder %v1535_v21, %v758_v61  ;;  %vm760_vm15 = vcmp.eq.s32.totalorder %v1537_v28, %v758_v61  ;;  %v857_v47 = vsel %vm856_vm10, %v855_v29, %v1619_v23 }
0x147a   : > { %v761_v2 = vsel %vm759_vm11, -inf, %v734_v41  ;;  %v762_v3 = vsel %vm760_vm15, -inf, %v735_v44  ;;  %vm1734_vm11 = vcmask 89088   ;;  %v859_v1 = vsel %vm858_vm9, %v857_v47, %v1628_v46 }
0x147b   : > { %v763_v4 = vmax.f32 %v761_v2, %v762_v3 }
0x147d   : > { %764 = vmax.xlane.f32.xlu1 %v763_v4 }
0x1506   : > { %v1637_v5 = vpop.xlane.xlu1 %764 }
0x1507   : > { %vm766_vm0 = vcmp.eq.f32.partialorder %v761_v2, %v1637_v5  ;;  %vm767_vm2 = vcmp.eq.f32.partialorder %v762_v3, %v1637_v5  ;;  %v861_v22 = vsel %vm1748_vm6, %v859_v1, %v1637_v5 }
0x1508   : > { %v768_v6 = vsel %vm766_vm0, %v1535_v21, 2147483647  ;;  %v769_v7 = vsel %vm767_vm2, %v1537_v28, 2147483647 }
0x1509   : > { %vm770_vm3 = vcmp.lt.s32.totalorder %v768_v6, %v769_v7 }
0x150a   : > { %v771_v8 = vsel %vm770_vm3, %v768_v6, %v769_v7 }
0x150b   : > { %v773_v9 = vshra.s32 %v771_v8, 16  ;;  %v772_v11 = vand.u32 65535, %v771_v8 }
0x150d   : > { %v775_v10 = vcvt.s32.f32 %v773_v9  ;;  %v774_v13 = vcvt.s32.f32 %v772_v11 }
0x150f   : > { %776 = vmin.xlane.f32.xlu0 %v775_v10 }
0x1598   : > { %v777_v12 = vpop.xlane.xlu0 %776 }
0x1599   : > { %vm778_vm7 = vcmp.eq.f32.partialorder %v775_v10, %v777_v12  ;;  %v783_v15 = vcvt.f32.s32 %v777_v12 }
0x159a   : > { %v779_v14 = vsel %vm778_vm7, %v774_v13, inf }
0x159b   : > { %780 = vmin.xlane.f32.xlu1 %v779_v14  ;;  %v784_v17 = vshll.u32 %v783_v15, 16 }
0x1624   : > { %v781_v16 = vpop.xlane.xlu1 %780 }
0x1625   : > { %v782_v18 = vcvt.f32.s32 %v781_v16 }
0x1627   : > { %v785_v20 = vadd.s32 %v784_v17, %v782_v18 }
0x1629   : > { %v876_v24 = vsel %vm1734_vm11, %v875_v62, %v785_v20  ;;  %vm786_vm15 = vcmp.eq.s32.totalorder %v1535_v21, %v785_v20  ;;  %vm787_vm0 = vcmp.eq.s32.totalorder %v1537_v28, %v785_v20 }
0x162a   : > { %v788_v25 = vsel %vm786_vm15, -inf, %v761_v2  ;;  %v789_v26 = vsel %vm787_vm0, -inf, %v762_v3  ;;  %vm862_vm15 = vcmask 97280  }
0x162b   : > { %v790_v27 = vmax.f32 %v788_v25, %v789_v26 }
0x162d   : > { %791 = vmax.xlane.f32.xlu0 %v790_v27 }
0x16b6   : > { %v792_v30 = vpop.xlane.xlu0 %791 }
0x16b7   : > { %vm793_vm2 = vcmp.eq.f32.partialorder %v788_v25, %v792_v30  ;;  %vm794_vm3 = vcmp.eq.f32.partialorder %v789_v26, %v792_v30  ;;  %v863_v43 = vsel %vm862_vm15, %v861_v22, %v792_v30 }
0x16b8   : > { %v795_v31 = vsel %vm793_vm2, %v1535_v21, 2147483647  ;;  %v796_v32 = vsel %vm794_vm3, %v1537_v28, 2147483647 }
0x16b9   : > { %vm797_vm7 = vcmp.lt.s32.totalorder %v795_v31, %v796_v32 }
0x16ba   : > { %v798_v33 = vsel %vm797_vm7, %v795_v31, %v796_v32 }
0x16bb   : > { %v800_v34 = vshra.s32 %v798_v33, 16  ;;  %v799_v36 = vand.u32 65535, %v798_v33 }
0x16bd   : > { %v802_v35 = vcvt.s32.f32 %v800_v34  ;;  %v801_v38 = vcvt.s32.f32 %v799_v36 }
0x16bf   : > { %803 = vmin.xlane.f32.xlu1 %v802_v35 }
0x1748   : > { %v804_v37 = vpop.xlane.xlu1 %803 }
0x1749   : > { %vm805_vm11 = vcmp.eq.f32.partialorder %v802_v35, %v804_v37  ;;  %v810_v40 = vcvt.f32.s32 %v804_v37 }
0x174a   : > { %v806_v39 = vsel %vm805_vm11, %v801_v38, inf }
0x174b   : > { %807 = vmin.xlane.f32.xlu0 %v806_v39  ;;  %v811_v44 = vshll.u32 %v810_v40, 16 }
0x17d4   : > { %v808_v41 = vpop.xlane.xlu0 %807 }
0x17d5   : > { %v809_v45 = vcvt.f32.s32 %v808_v41 }
0x17d7   : > { %v812_v48 = vadd.s32 %v811_v44, %v809_v45 }
0x17d9   : > { %v877_v49 = vsel %vm862_vm15, %v876_v24, %v812_v48  ;;  %vm813_vm0 = vcmp.eq.s32.totalorder %v1535_v21, %v812_v48  ;;  %vm814_vm2 = vcmp.eq.s32.totalorder %v1537_v28, %v812_v48 }
0x17da   : > { %v815_v50 = vsel %vm813_vm0, -inf, %v788_v25  ;;  %v816_v51 = vsel %vm814_vm2, -inf, %v789_v26 }
0x17db   : > { %v817_v52 = vmax.f32 %v815_v50, %v816_v51 }
0x17dd   : > { %818 = vmax.xlane.f32.xlu1 %v817_v52 }
0x1866   : > { %v819_v63 = vpop.xlane.xlu1 %818 }
0x1867   : > { %vm820_vm4 = vcmp.eq.f32.partialorder %v815_v50, %v819_v63  ;;  %vm821_vm14 = vcmp.eq.f32.partialorder %v816_v51, %v819_v63  ;;  %v865_v19 = vsel %vm864_vm5, %v863_v43, %v819_v63 }
0x1868   : > { %v822_v42 = vsel %vm820_vm4, %v1535_v21, 2147483647  ;;  %v823_v0 = vsel %vm821_vm14, %v1537_v28, 2147483647  ;;  %v880_v23 = vsel %vm879_vm13, %v865_v19, -inf }
0x1869   : > { %882 = vst [vmem:[#allocation3] sm:$0xff] %v880_v23  ;;  %vm824_vm8 = vcmp.lt.s32.totalorder %v822_v42, %v823_v0 }
0x186a   : > { %v825_v46 = vsel %vm824_vm8, %v822_v42, %v823_v0 }
0x186b   : > { %v827_v60 = vshra.s32 %v825_v46, 16  ;;  %v826_v62 = vand.u32 65535, %v825_v46 }
0x186d   : > { %v829_v61 = vcvt.s32.f32 %v827_v60  ;;  %v828_v3 = vcvt.s32.f32 %v826_v62 }
0x186f   : > { %830 = vmin.xlane.f32.xlu0 %v829_v61 }
0x18f8   : > { %v831_v2 = vpop.xlane.xlu0 %830 }
0x18f9   : > { %vm832_vm1 = vcmp.eq.f32.partialorder %v829_v61, %v831_v2  ;;  %v837_v5 = vcvt.f32.s32 %v831_v2 }
0x18fa   : > { %v833_v4 = vsel %vm832_vm1, %v828_v3, inf }
0x18fb   : > { %834 = vmin.xlane.f32.xlu1 %v833_v4  ;;  %v838_v7 = vshll.u32 %v837_v5, 16 }
0x1984   : > { %v835_v6 = vpop.xlane.xlu1 %834 }
0x1985   : > { %v836_v21 = vcvt.f32.s32 %v835_v6 }
0x1987   : > { %v839_v8 = vadd.s32 %v838_v7, %v836_v21  ;;  %887 = sbr.rel (%p1025_p11) target bundleno = 6548 (0x1994), region = 56 }
0x1989   : > { %v878_v28 = vsel %vm864_vm5, %v877_v49, %v839_v8 }
0x198a   : > { %v881_v9 = vsel %vm879_vm13, %v878_v28, 0 }
0x198b   : > { %883 = vst [vmem:[#allocation4] sm:$0xff] %v881_v9 }
0x198c   : > { %v888_v10 = vld [vmem:[#allocation3] sm:$0xff] }
0x198d   : > { %889 = vst [vmem:[#allocation11] sm:$0xff] %v888_v10 }
0x1992   : > { %v890_v11 = vld [vmem:[#allocation4] sm:$0xff] }
0x1993   : > { %891 = vst [vmem:[#allocation12] sm:$0xff] %v890_v11 }
0x1994 PF: > { %p1098_p13 = scmp.eq.s32.totalorder %s1432_s24, 2  ;;  %s1371_s12 = smov [#allocation11]  }
0x1995   : > { %s901_s8 = sshll.u32 %s1371_s12, 4  ;;  %s1372_s16 = smov [#allocation12]   ;;  %s902_s8 = int_to_ptr.vmem [resolvable:$true] %s901_s8 }
0x1996   : > { %s914_s28 = sshll.u32 %s1372_s16, 4  ;;  %s1243_s9 = scalar_lea.vmem %s902_s8, 128  ;;  %s915_s28 = int_to_ptr.vmem [resolvable:$true] %s914_s28 }
0x1997   : > { %p1244_p2 = scmp.ne.s32.totalorder %s902_s8, %s1243_s9  ;;  %p1250_p4 = scmp.lt.s32.totalorder %s902_s8, %s902_s8 }
0x1998   : > { %p1251_p10 = scmp.lt.s32.totalorder %s1243_s9, %s1243_s9 }
0x1999   : > { %p1245_p7 = pnand %p1244_p2, %p1098_p13 }
0x199a   : > { %p1252_p0 = por %p1251_p10, %p1250_p4 }
0x199b   : > { %p1246_p9 = pneg %p1245_p7 }
0x199d   : > { %p1253_p1 = pnand %p1252_p0, %p1246_p9 }
0x199f   : > { %1256 = shalt.err (!%p1253_p1)
}
0x19a0   : > { %1075 = dma.vmem_to_hbm [thread:$0]  (%p1098_p13), %s902_s8, 128, %s1727_s4, [#allocation7]  }
0x19a1   : > { %s1267_s7 = scalar_lea.vmem %s915_s28, 128  ;;  %p1274_p12 = scmp.lt.s32.totalorder %s915_s28, %s915_s28 }
0x19a2   : > { %p1268_p5 = scmp.ne.s32.totalorder %s915_s28, %s1267_s7  ;;  %p1275_p8 = scmp.lt.s32.totalorder %s1267_s7, %s1267_s7 }
0x19a4   : > { %p1269_p3 = pnand %p1268_p5, %p1098_p13  ;;  %p1276_p11 = por %p1275_p8, %p1274_p12 }
0x19a6   : > { %p1270_p6 = pneg %p1269_p3 }
0x19a8   : > { %p1277_p2 = pnand %p1276_p11, %p1270_p6 }
0x19aa   : > { %1280 = shalt.err (!%p1277_p2)
}
0x19ab   : > { %1077 = dma.vmem_to_hbm [thread:$0]  (%p1098_p13), %s915_s28, 128, %s1728_s5, [#allocation13]  }
0x19ac   : > { %1328 = dma.done.wait (%p1098_p13), [#allocation7], 128  }
0x19ad   : > { %1330 = vsyncadd (%p1098_p13), [#allocation7], 4294967168 }
0x19ae   : > { %1332 = dma.done.wait (%p1098_p13), [#allocation13], 128  }
0x19af   : > { %1334 = vsyncadd (%p1098_p13), [#allocation13], 4294967168 }
0x19b0 PF: > { %s20_s23 = sadd.s32 1, %s1357_s23   ;;  %s1749_s25 = smov %s1756_s18 }
0x19b1   : > { %p17_p7 = scmp.ge.s32.totalorder %s20_s23, 5   ;;  %s1750_s18 = smov %s1341_s19 }
0x19b2   : > { %s1751_s19 = smov %s1345_s20  ;;  %s1752_s20 = smov %s1500_s15 }
0x19b3   : > { %s1753_s21 = smov %s1353_s22  ;;  %s1754_s22 = smov %s1749_s25 }
0x19b4   :  { %19 = sbr.rel (!%p17_p7) target bundleno = 6 (0x6), region = 99 }
0x19b9   :  { %931 = vsyncpa [#allocation6], 1 }
0x19ba   :  { %933 = vsyncpa [#allocation6 + $0x1], 1 }
0x19bb   :  { %934 = vsyncpa [#allocation9], 1 }
0x19bc   :  { %935 = vsyncpa [#allocation7], 1 }
0x19bd   :  { %937 = vsyncpa [#allocation7 + $0x1], 1 }
0x19be   :  { %938 = vsyncpa [#allocation13], 1 }

</bundles_post_ra>
